<compile_context>
chip_gen: v7x
topology: tpu7x:2x2x1
jax: 0.10.0
libtpu: 0.0.40
codegen_flags: <defaults>
</compile_context>

<pallas_src>
import functools

import jax
import jax.numpy as jnp
from jax.experimental import pallas as pl
from jax.experimental.pallas import tpu as pltpu

NUM_GROUPS = 32
EPS = 1e-6


# --------------------------------------------------------------------------
# Hardware-aware knobs
# --------------------------------------------------------------------------
def _vmem_capacity_bytes():
    try:
        cap = getattr(pltpu.get_tpu_info(), "vmem_capacity_bytes", None)
        if cap:
            return int(cap)
    except Exception:
        pass
    return 64 * 2**20          # conservative fallback: v7x per-TensorCore VMEM


def _vmem_budget_bytes():
    # Never hand Mosaic the full physical VMEM: leave ~16 MiB headroom for its
    # internal scratch, semaphores and the double buffers it adds.
    return max(_vmem_capacity_bytes() - 16 * 2**20, 32 * 2**20)


def _bf16_eup_ok():
    # v6e / v7x have a bf16 EUP (exp); v5e and older do not.
    try:
        kind = jax.devices()[0].device_kind.lower()
    except Exception:
        return False
    return not any(f"v{n}" in kind for n in (2, 3, 4, 5))


def _pick_tile(n, target):
    """Largest tile <= target that divides n; prefers multiples of 16 so bf16
    blocks keep native sublane packing.  Falls back to the full axis."""
    if n <= target:
        return n
    for step in (16, 8):
        if n % step:
            continue
        t = (target // step) * step
        while t >= step:
            if n % t == 0:
                return t
            t -= step
    return n


def _shrink_for_parallelism(b, hw, t):
    # v7x: 2 TensorCores share the 'parallel' grid axes -> keep >= 2 work units.
    while b * (hw // t) < 2 and t % 2 == 0 and t > 16:
        t //= 2
    return t


def _vmem_limit(working_set_bytes, budget):
    return int(min(max(4 * working_set_bytes, 16 * 2**20), budget))


def _const_spec(shape, grid_rank):
    """Grid-invariant input: constant index map + single buffer (double
    buffering something that is never re-fetched only burns VMEM)."""
    zero = (0,) * len(shape)
    imap = (lambda i, j: zero) if grid_rank == 2 else (lambda i, j, k: zero)
    return pl.BlockSpec(shape, imap, pipeline_mode=pl.Buffered(1))


# --------------------------------------------------------------------------
# Kernel 1: GroupNorm statistics -> fused scale/shift   (grid = (B, HW tiles))
# --------------------------------------------------------------------------
def _gn_stats_kernel(x_ref, gamma_ref, beta_ref, oh_ref, oht_ref,
                     scale_ref, shift_ref, sum_ref, sumsq_ref, *, hw, c):
    i = pl.program_id(1)

    @pl.when(i == 0)
    def _():
        sum_ref[...] = jnp.zeros_like(sum_ref)
        sumsq_ref[...] = jnp.zeros_like(sumsq_ref)

    x = x_ref[0].astype(jnp.float32)                          # (tile, C)
    sum_ref[...] += jnp.sum(x, axis=0, keepdims=True)
    sumsq_ref[...] += jnp.sum(x * x, axis=0, keepdims=True)

    @pl.when(i == pl.num_programs(1) - 1)
    def _():
        # Grouped reduction as tiny matmuls against the channel->group one-hot
        # (keeps everything lane-aligned, no cross-lane reshapes).
        n = float(hw * (c // NUM_GROUPS))
        mean_g = jnp.dot(sum_ref[...], oh_ref[...],
                         preferred_element_type=jnp.float32) / n        # (1, G)
        msq_g = jnp.dot(sumsq_ref[...], oh_ref[...],
                        preferred_element_type=jnp.float32) / n         # (1, G)
        var_g = jnp.maximum(msq_g - mean_g * mean_g, 0.0)   # clamp one-pass var
        mean_c = jnp.dot(mean_g, oht_ref[...], preferred_element_type=jnp.float32)
        var_c = jnp.dot(var_g, oht_ref[...], preferred_element_type=jnp.float32)
        s = gamma_ref[...] * jax.lax.rsqrt(var_c + EPS)                  # (1, C)
        scale_ref[0] = s
        shift_ref[0] = beta_ref[...] - mean_c * s


# --------------------------------------------------------------------------
# Kernel 2: normalize + k/v 1x1 convs (concat weights)  (grid = (B, HW tiles))
# --------------------------------------------------------------------------
def _kv_proj_kernel(scale_ref, shift_ref, x_ref, wkv_ref, bkv_ref,
                    k_ref, v_ref, *, c):
    # Fused GroupNorm affine in f32, then one bf16 MXU matmul against the
    # concatenated (C, 2C) weight; slice the lane-concatenated result.
    h = (x_ref[0].astype(jnp.float32) * scale_ref[0]
         + shift_ref[0]).astype(jnp.bfloat16)                            # (tile, C)
    y = (jnp.dot(h, wkv_ref[...], preferred_element_type=jnp.float32)
         + bkv_ref[...]).astype(jnp.bfloat16)                            # (tile, 2C)
    k_ref[0] = y[:, :c]
    v_ref[0] = y[:, c:]


# --------------------------------------------------------------------------
# Kernel 3: flash attention + fused q projection + residual
#           (grid = (B, q tiles, k tiles))
# --------------------------------------------------------------------------
def _flash_attn_kernel(scale_ref, shift_ref, x_ref, k_ref, v_ref,
                       wq_ref, bq_ref, o_ref,
                       q_scr, m_scr, l_scr, acc_scr, *, exp_dtype):
    ki = pl.program_id(2)

    @pl.when(ki == 0)
    def _():
        # q projection for this query tile, reusing the residual x block.
        # GroupNorm affine + 1/sqrt(C) are already folded into scale/shift/wq/bq.
        h = (x_ref[0].astype(jnp.float32) * scale_ref[0]
             + shift_ref[0]).astype(jnp.bfloat16)                        # (tq, C)
        q = jnp.dot(h, wq_ref[...], preferred_element_type=jnp.float32) + bq_ref[...]
        q_scr[...] = q.astype(jnp.bfloat16)
        m_scr[...] = jnp.full_like(m_scr, -jnp.inf)
        l_scr[...] = jnp.zeros_like(l_scr)
        acc_scr[...] = jnp.zeros_like(acc_scr)

    # Scores for this (query tile, key tile); attention scale already folded in.
    s = jax.lax.dot_general(q_scr[...], k_ref[0], (((1,), (1,)), ((), ())),
                            preferred_element_type=jnp.float32)          # (tq, tk)

    m_prev = m_scr[...]                                                  # (tq, 1)
    m_new = jnp.maximum(m_prev, jnp.max(s, axis=-1, keepdims=True))
    alpha = jnp.exp(m_prev - m_new)
    # bf16 exp on v6e/v7x (bf16 EUP), f32 on v5e and older.
    p = jnp.exp((s - m_new).astype(exp_dtype))                           # (tq, tk)
    l_scr[...] = alpha * l_scr[...] + jnp.sum(p, axis=-1, keepdims=True,
                                              dtype=jnp.float32)
    acc_scr[...] = alpha * acc_scr[...] + jnp.dot(
        p.astype(jnp.bfloat16), v_ref[0], preferred_element_type=jnp.float32)
    m_scr[...] = m_new

    @pl.when(ki == pl.num_programs(2) - 1)
    def _():
        inv_l = pl.reciprocal(l_scr[...], approx=True)   # EUP slot, ~free
        o_ref[0] = x_ref[0].astype(jnp.float32) + acc_scr[...] * inv_l


# --------------------------------------------------------------------------
# Wrapper
# --------------------------------------------------------------------------
def nonlocal_block(x_nchw, params):
    b, c, h, w = x_nchw.shape
    hw = h * w
    g = NUM_GROUPS
    assert c % g == 0, "channels must be divisible by 32 (GroupNorm groups)"
    gs = c // g

    budget = _vmem_budget_bytes()
    big_vmem = budget > 80 * 2**20          # v5e/v6e (128 MiB) vs v7x (64 MiB)
    exp_dtype = jnp.bfloat16 if _bf16_eup_ok() else jnp.float32

    # NCHW -> (B, HW, C) tokens, cast to bf16 once (transpose + cast fuse in XLA).
    x_tok = jnp.transpose(x_nchw.reshape(b, c, hw), (0, 2, 1)).astype(jnp.bfloat16)

    # channel -> group one-hot matrices (grouped reduction as an MXU matmul)
    ch = jnp.arange(c)
    oh = (ch[:, None] // gs == jnp.arange(g)[None, :]).astype(jnp.float32)  # (C, G)
    oh_t = oh.T                                                             # (G, C)

    gamma = params["gamma"].reshape(1, c).astype(jnp.float32)
    beta = params["beta"].reshape(1, c).astype(jnp.float32)

    # conv weights (C_out, C_in, 1, 1) -> (C_in, C_out) for token @ W; fold the
    # 1/sqrt(C) attention scale into wq/bq; concatenate k & v weights.
    inv_sqrt_c = float(c) ** (-0.5)
    wq = (params["wq"][:, :, 0, 0].T * inv_sqrt_c).astype(jnp.bfloat16)
    bq = (params["bq"].reshape(1, c) * inv_sqrt_c).astype(jnp.float32)
    wkv = jnp.concatenate([params["wk"][:, :, 0, 0].T,
                           params["wv"][:, :, 0, 0].T], axis=1).astype(jnp.bfloat16)
    bkv = jnp.concatenate([params["bk"], params["bv"]]
                          ).reshape(1, 2 * c).astype(jnp.float32)

    # ---- generation-aware tile selection ---------------------------------
    ts = _pick_tile(hw, 2048 if big_vmem else 1024)
    tp = _pick_tile(hw, 1024 if big_vmem else 512)
    # K/V resident per batch when they fit comfortably -> fetched once per
    # batch instead of once per query tile.
    kv_resident_bytes = 2 * 2 * hw * c * 2          # k+v, double-buffered, bf16
    if kv_resident_bytes <= budget // 2:
        tk = hw
    else:
        tk = _pick_tile(hw, 2048 if big_vmem else 1024)
    tq = _pick_tile(hw, 1024 if big_vmem else 512)

    def attn_ws(tq_, tk_):
        return (4 * tk_ * c * 2            # k + v blocks (bf16, double-buffered)
                + 2 * tq_ * c * 2          # x block (bf16)
                + 2 * tq_ * c * 4          # output block (f32, double-buffered)
                + tq_ * c * 6              # q scratch (bf16) + acc scratch (f32)
                + 3 * tq_ * tk_ * 4        # score / prob temporaries
                + c * c * 2 + 16 * c * 4)  # wq + scale/shift/bq

    for _ in range(8):                      # shrink until the pass-3 set fits
        if attn_ws(tq, tk) <= budget:
            break
        if tk > tq and tk > 256:
            tk = _pick_tile(hw, max(tk // 2, 256))
        elif tq > 16:
            tq = _pick_tile(hw, max(tq // 2, 16))
        else:
            break

    tp = _shrink_for_parallelism(b, hw, tp)
    tq = _shrink_for_parallelism(b, hw, tq)

    # ---- pass 1: GroupNorm statistics -> fused per-(batch, channel) scale/shift
    stats_ws = 2 * ts * c * 2 + 2 * c * g * 4 + 24 * c * 4
    scale, shift = pl.pallas_call(
        functools.partial(_gn_stats_kernel, hw=hw, c=c),
        out_shape=(jax.ShapeDtypeStruct((b, 1, c), jnp.float32),
                   jax.ShapeDtypeStruct((b, 1, c), jnp.float32)),
        grid_spec=pltpu.PrefetchScalarGridSpec(
            num_scalar_prefetch=0,
            grid=(b, hw // ts),
            in_specs=[
                pl.BlockSpec((1, ts, c), lambda bi, i: (bi, i, 0)),   # x (bf16)
                _const_spec((1, c), 2),                               # gamma
                _const_spec((1, c), 2),                               # beta
                _const_spec((c, g), 2),                               # one-hot
                _const_spec((g, c), 2),                               # one-hot.T
            ],
            out_specs=[pl.BlockSpec((1, 1, c), lambda bi, i: (bi, 0, 0)),
                       pl.BlockSpec((1, 1, c), lambda bi, i: (bi, 0, 0))],
            scratch_shapes=[pltpu.VMEM((1, c), jnp.float32),
                            pltpu.VMEM((1, c), jnp.float32)],
        ),
        compiler_params=pltpu.CompilerParams(
            dimension_semantics=("parallel", "arbitrary"),
            vmem_limit_bytes=_vmem_limit(stats_ws, budget)),
    )(x_tok, gamma, beta, oh, oh_t)

    # ---- pass 2: normalize + concatenated k/v 1x1 convolutions (bf16)
    proj_ws = (2 * tp * c * 2 + 4 * tp * c * 2 + tp * 2 * c * 4
               + 2 * c * c * 2 + 24 * c * 4)
    k_tok, v_tok = pl.pallas_call(
        functools.partial(_kv_proj_kernel, c=c),
        out_shape=(jax.ShapeDtypeStruct((b, hw, c), jnp.bfloat16),) * 2,
        grid_spec=pltpu.PrefetchScalarGridSpec(
            num_scalar_prefetch=0,
            grid=(b, hw // tp),
            in_specs=[
                pl.BlockSpec((1, 1, c), lambda bi, ti: (bi, 0, 0)),    # scale
                pl.BlockSpec((1, 1, c), lambda bi, ti: (bi, 0, 0)),    # shift
                pl.BlockSpec((1, tp, c), lambda bi, ti: (bi, ti, 0)),  # x (bf16)
                _const_spec((c, 2 * c), 2),                            # wkv
                _const_spec((1, 2 * c), 2),                            # bkv
            ],
            out_specs=[pl.BlockSpec((1, tp, c), lambda bi, ti: (bi, ti, 0))] * 2,
        ),
        compiler_params=pltpu.CompilerParams(
            dimension_semantics=("parallel", "parallel"),
            vmem_limit_bytes=_vmem_limit(proj_ws, budget)),
    )(scale, shift, x_tok, wkv, bkv)

    # ---- pass 3: flash attention (+ fused q projection) + residual add
    n_kv_steps = hw // tk
    x_attn_spec = pl.BlockSpec(
        (1, tq, c), lambda bi, qi, ki: (bi, qi, 0),
        pipeline_mode=pl.Buffered(1) if n_kv_steps > 1 else None)

    out_tok = pl.pallas_call(
        functools.partial(_flash_attn_kernel, exp_dtype=exp_dtype),
        out_shape=jax.ShapeDtypeStruct((b, hw, c), jnp.float32),
        grid_spec=pltpu.PrefetchScalarGridSpec(
            num_scalar_prefetch=0,
            grid=(b, hw // tq, n_kv_steps),
            in_specs=[
                pl.BlockSpec((1, 1, c), lambda bi, qi, ki: (bi, 0, 0)),   # scale
                pl.BlockSpec((1, 1, c), lambda bi, qi, ki: (bi, 0, 0)),   # shift
                x_attn_spec,                                              # x (residual + q src)
                pl.BlockSpec((1, tk, c), lambda bi, qi, ki: (bi, ki, 0)), # k
                pl.BlockSpec((1, tk, c), lambda bi, qi, ki: (bi, ki, 0)), # v
                _const_spec((c, c), 3),                                   # wq (scaled)
                _const_spec((1, c), 3),                                   # bq (scaled)
            ],
            out_specs=pl.BlockSpec((1, tq, c), lambda bi, qi, ki: (bi, qi, 0)),
            scratch_shapes=[pltpu.VMEM((tq, c), jnp.bfloat16),  # q tile
                            pltpu.VMEM((tq, 1), jnp.float32),   # running max
                            pltpu.VMEM((tq, 1), jnp.float32),   # running denom
                            pltpu.VMEM((tq, c), jnp.float32)],  # output accumulator
        ),
        compiler_params=pltpu.CompilerParams(
            dimension_semantics=("parallel", "parallel", "arbitrary"),
            vmem_limit_bytes=_vmem_limit(attn_ws(tq, tk), budget)),
    )(scale, shift, x_tok, k_tok, v_tok, wq, bq)

    # (B, HW, C) -> NCHW
    return jnp.transpose(out_tok, (0, 2, 1)).reshape(b, c, h, w)


# --------------------------------------------------------------------------
# Plain-JAX reference matching the PyTorch forward, for verification.
# --------------------------------------------------------------------------
def _reference(x, params):
    b, c, h, w = x.shape
    g = NUM_GROUPS
    xr = x.reshape(b, g, c // g, h, w)
    mean = xr.mean(axis=(2, 3, 4), keepdims=True)
    var = xr.var(axis=(2, 3, 4), keepdims=True)
    hn = (xr - mean) / jnp.sqrt(var + EPS)
    hn = hn.reshape(b, c, h, w)
    hn = hn * params["gamma"][None, :, None, None] + params["beta"][None, :, None, None]

    def conv1x1(t, wname, bname):
        wt = params[wname][:, :, 0, 0]           # (out, in)
        return (jnp.einsum("oc,bchw->bohw", wt, t)
                + params[bname][None, :, None, None])

    q = conv1x1(hn, "wq", "bq")
    k = conv1x1(hn, "wk", "bk")
    v = conv1x1(hn, "wv", "bv")
    q = q.reshape(b, c, h * w).transpose(0, 2, 1)
    k = k.reshape(b, c, h * w)
    v = v.reshape(b, c, h * w)
    attn = jnp.einsum("bic,bcj->bij", q, k) * (int(c) ** (-0.5))
    attn = jax.nn.softmax(attn, axis=2)
    a = jnp.einsum("bcj,bij->bci", v, attn)
    return x + a.reshape(b, c, h, w)


if __name__ == "__main__":
    B, C, H, W = 2, 64, 8, 8   # C must be a multiple of 32 for GroupNorm(32, C)

    key = jax.random.PRNGKey(0)
    keys = jax.random.split(key, 10)
    x = jax.random.normal(keys[0], (B, C, H, W), dtype=jnp.float32)

    params = {
        "gamma": 1.0 + 0.1 * jax.random.normal(keys[1], (C,), dtype=jnp.float32),
        "beta": 0.1 * jax.random.normal(keys[2], (C,), dtype=jnp.float32),
        "wq": 0.05 * jax.random.normal(keys[3], (C, C, 1, 1), dtype=jnp.float32),
        "bq": 0.05 * jax.random.normal(keys[4], (C,), dtype=jnp.float32),
        "wk": 0.05 * jax.random.normal(keys[5], (C, C, 1, 1), dtype=jnp.float32),
        "bk": 0.05 * jax.random.normal(keys[6], (C,), dtype=jnp.float32),
        "wv": 0.05 * jax.random.normal(keys[7], (C, C, 1, 1), dtype=jnp.float32),
        "bv": 0.05 * jax.random.normal(keys[8], (C,), dtype=jnp.float32),
    }

    out = jax.block_until_ready(jax.jit(nonlocal_block)(x, params))
    ref = jax.block_until_ready(_reference(x, params))

    assert out.shape == (B, C, H, W)
    # bf16 streaming / bf16 MXU operands / approx reciprocal => relaxed tolerance.
    err = float(jnp.max(jnp.abs(out - ref)))
    assert jnp.allclose(out, ref, rtol=2e-2, atol=2e-2), f"max abs err = {err}"

    print("KERNEL_OK")
</pallas_src>

<mosaic_0001>
module attributes {stable_mosaic.version = 11 : i64} {
  func.func @_gn_stats_kernel(%arg0: i32, %arg1: i32, %arg2: memref<1x64x64xbf16, #tpu.memory_space<vmem>>, %arg3: memref<1x64xf32, #tpu.memory_space<vmem>>, %arg4: memref<1x64xf32, #tpu.memory_space<vmem>>, %arg5: memref<64x32xf32, #tpu.memory_space<vmem>>, %arg6: memref<32x64xf32, #tpu.memory_space<vmem>>, %arg7: memref<1x1x64xf32, #tpu.memory_space<vmem>>, %arg8: memref<1x1x64xf32, #tpu.memory_space<vmem>>, %arg9: memref<1x64xf32, #tpu.memory_space<vmem>>, %arg10: memref<1x64xf32, #tpu.memory_space<vmem>>) attributes {dimension_semantics = [#tpu.dimension_semantics<parallel>, #tpu.dimension_semantics<arbitrary>], iteration_bounds = array<i64: 2, 1>, scalar_prefetch = 0 : i64, scratch_operands = 2 : i64, tpu.core_type = #tpu.core_type<tc>, window_params = [{transform_indices = @transform_0, window_bounds = array<i64: 1, 64, 64>}, {pipeline_mode = #tpu.pipeline_mode<synchronous>, transform_indices = @transform_1, window_bounds = array<i64: 1, 64>}, {pipeline_mode = #tpu.pipeline_mode<synchronous>, transform_indices = @transform_2, window_bounds = array<i64: 1, 64>}, {pipeline_mode = #tpu.pipeline_mode<synchronous>, transform_indices = @transform_3, window_bounds = array<i64: 64, 32>}, {pipeline_mode = #tpu.pipeline_mode<synchronous>, transform_indices = @transform_4, window_bounds = array<i64: 32, 64>}, {transform_indices = @transform_5, window_bounds = array<i64: 1, 1, 64>}, {transform_indices = @transform_6, window_bounds = array<i64: 1, 1, 64>}]} {
    %c0_i32 = arith.constant 0 : i32
    %0 = arith.cmpi eq, %arg1, %c0_i32 : i32
    %1 = arith.extui %0 : i1 to i32
    %c0_i32_0 = arith.constant 0 : i32
    %2 = arith.cmpi ne, %1, %c0_i32_0 : i32
    scf.if %2 {
      %cst_14 = arith.constant 0.000000e+00 : f32
      %20 = vector.broadcast %cst_14 : f32 to vector<1x64xf32>
      %c0_15 = arith.constant 0 : index
      %c0_16 = arith.constant 0 : index
      %21 = vector.load %arg9[%c0_15, %c0_16] : memref<1x64xf32, #tpu.memory_space<vmem>>, vector<1x64xf32>
      tpu.vector_store %arg9[%c0_15, %c0_16], %20 {strides = array<i32>} : memref<1x64xf32, #tpu.memory_space<vmem>>, vector<1x64xf32>,
      %cst_17 = arith.constant 0.000000e+00 : f32
      %22 = vector.broadcast %cst_17 : f32 to vector<1x64xf32>
      %c0_18 = arith.constant 0 : index
      %c0_19 = arith.constant 0 : index
      %23 = vector.load %arg10[%c0_18, %c0_19] : memref<1x64xf32, #tpu.memory_space<vmem>>, vector<1x64xf32>
      tpu.vector_store %arg10[%c0_18, %c0_19], %22 {strides = array<i32>} : memref<1x64xf32, #tpu.memory_space<vmem>>, vector<1x64xf32>,
    } else {
    }
    %c0 = arith.constant 0 : index
    %c0_1 = arith.constant 0 : index
    %c0_2 = arith.constant 0 : index
    %3 = vector.load %arg2[%c0, %c0_1, %c0_2] : memref<1x64x64xbf16, #tpu.memory_space<vmem>>, vector<1x64x64xbf16>
    %4 = vector.shape_cast %3 : vector<1x64x64xbf16> to vector<64x64xbf16>
    %5 = arith.extf %4 : vector<64x64xbf16> to vector<64x64xf32>
    %c0_3 = arith.constant 0 : index
    %c0_4 = arith.constant 0 : index
    %6 = vector.load %arg9[%c0_3, %c0_4] : memref<1x64xf32, #tpu.memory_space<vmem>>, vector<1x64xf32>
    %cst = arith.constant dense<0.000000e+00> : vector<64xf32>
    %7 = vector.multi_reduction <add>, %5, %cst [0] : vector<64x64xf32> to vector<64xf32>
    %8 = vector.shape_cast %7 : vector<64xf32> to vector<1x64xf32>
    %9 = arith.addf %6, %8 : vector<1x64xf32>
    %c0_5 = arith.constant 0 : index
    %c0_6 = arith.constant 0 : index
    %10 = vector.load %arg9[%c0_5, %c0_6] : memref<1x64xf32, #tpu.memory_space<vmem>>, vector<1x64xf32>
    tpu.vector_store %arg9[%c0_5, %c0_6], %9 {strides = array<i32>} : memref<1x64xf32, #tpu.memory_space<vmem>>, vector<1x64xf32>,
    %c0_7 = arith.constant 0 : index
    %c0_8 = arith.constant 0 : index
    %11 = vector.load %arg10[%c0_7, %c0_8] : memref<1x64xf32, #tpu.memory_space<vmem>>, vector<1x64xf32>
    %12 = arith.mulf %5, %5 : vector<64x64xf32>
    %cst_9 = arith.constant dense<0.000000e+00> : vector<64xf32>
    %13 = vector.multi_reduction <add>, %12, %cst_9 [0] : vector<64x64xf32> to vector<64xf32>
    %14 = vector.shape_cast %13 : vector<64xf32> to vector<1x64xf32>
    %15 = arith.addf %11, %14 : vector<1x64xf32>
    %c0_10 = arith.constant 0 : index
    %c0_11 = arith.constant 0 : index
    %16 = vector.load %arg10[%c0_10, %c0_11] : memref<1x64xf32, #tpu.memory_space<vmem>>, vector<1x64xf32>
    tpu.vector_store %arg10[%c0_10, %c0_11], %15 {strides = array<i32>} : memref<1x64xf32, #tpu.memory_space<vmem>>, vector<1x64xf32>,
    %c0_i32_12 = arith.constant 0 : i32
    %17 = arith.cmpi eq, %arg1, %c0_i32_12 : i32
    %18 = arith.extui %17 : i1 to i32
    %c0_i32_13 = arith.constant 0 : i32
    %19 = arith.cmpi ne, %18, %c0_i32_13 : i32
    scf.if %19 {
      %c0_14 = arith.constant 0 : index
      %c0_15 = arith.constant 0 : index
      %20 = vector.load %arg9[%c0_14, %c0_15] : memref<1x64xf32, #tpu.memory_space<vmem>>, vector<1x64xf32>
      %c0_16 = arith.constant 0 : index
      %c0_17 = arith.constant 0 : index
      %21 = vector.load %arg5[%c0_16, %c0_17] : memref<64x32xf32, #tpu.memory_space<vmem>>, vector<64x32xf32>
      %cst_18 = arith.constant dense<0.000000e+00> : vector<1x32xf32>
      %22 = tpu.matmul %20, %21, %cst_18 {dimension_numbers = #tpu.dot_dimension_numbers<[1], [0], [0], [1], [0, 0, 1, 1], [], []>} : vector<1x64xf32>, vector<64x32xf32>, vector<1x32xf32> -> vector<1x32xf32>
      %cst_19 = arith.constant 1.280000e+02 : f32
      %23 = vector.broadcast %cst_19 : f32 to vector<1x32xf32>
      %24 = arith.divf %22, %23 : vector<1x32xf32>
      %c0_20 = arith.constant 0 : index
      %c0_21 = arith.constant 0 : index
      %25 = vector.load %arg10[%c0_20, %c0_21] : memref<1x64xf32, #tpu.memory_space<vmem>>, vector<1x64xf32>
      %c0_22 = arith.constant 0 : index
      %c0_23 = arith.constant 0 : index
      %26 = vector.load %arg5[%c0_22, %c0_23] : memref<64x32xf32, #tpu.memory_space<vmem>>, vector<64x32xf32>
      %cst_24 = arith.constant dense<0.000000e+00> : vector<1x32xf32>
      %27 = tpu.matmul %25, %26, %cst_24 {dimension_numbers = #tpu.dot_dimension_numbers<[1], [0], [0], [1], [0, 0, 1, 1], [], []>} : vector<1x64xf32>, vector<64x32xf32>, vector<1x32xf32> -> vector<1x32xf32>
      %cst_25 = arith.constant 1.280000e+02 : f32
      %28 = vector.broadcast %cst_25 : f32 to vector<1x32xf32>
      %29 = arith.divf %27, %28 : vector<1x32xf32>
      %30 = arith.mulf %24, %24 : vector<1x32xf32>
      %31 = arith.subf %29, %30 : vector<1x32xf32>
      %cst_26 = arith.constant 0.000000e+00 : f32
      %32 = vector.broadcast %cst_26 : f32 to vector<1x32xf32>
      %33 = arith.maximumf %31, %32 : vector<1x32xf32>
      %c0_27 = arith.constant 0 : index
      %c0_28 = arith.constant 0 : index
      %34 = vector.load %arg6[%c0_27, %c0_28] : memref<32x64xf32, #tpu.memory_space<vmem>>, vector<32x64xf32>
      %cst_29 = arith.constant dense<0.000000e+00> : vector<1x64xf32>
      %35 = tpu.matmul %24, %34, %cst_29 {dimension_numbers = #tpu.dot_dimension_numbers<[1], [0], [0], [1], [0, 0, 1, 1], [], []>} : vector<1x32xf32>, vector<32x64xf32>, vector<1x64xf32> -> vector<1x64xf32>
      %c0_30 = arith.constant 0 : index
      %c0_31 = arith.constant 0 : index
      %36 = vector.load %arg6[%c0_30, %c0_31] : memref<32x64xf32, #tpu.memory_space<vmem>>, vector<32x64xf32>
      %cst_32 = arith.constant dense<0.000000e+00> : vector<1x64xf32>
      %37 = tpu.matmul %33, %36, %cst_32 {dimension_numbers = #tpu.dot_dimension_numbers<[1], [0], [0], [1], [0, 0, 1, 1], [], []>} : vector<1x32xf32>, vector<32x64xf32>, vector<1x64xf32> -> vector<1x64xf32>
      %c0_33 = arith.constant 0 : index
      %c0_34 = arith.constant 0 : index
      %38 = vector.load %arg3[%c0_33, %c0_34] : memref<1x64xf32, #tpu.memory_space<vmem>>, vector<1x64xf32>
      %cst_35 = arith.constant 9.99999997E-7 : f32
      %39 = vector.broadcast %cst_35 : f32 to vector<1x64xf32>
      %40 = arith.addf %37, %39 : vector<1x64xf32>
      %41 = math.rsqrt %40 : vector<1x64xf32>
      %42 = arith.mulf %38, %41 : vector<1x64xf32>
      %c0_36 = arith.constant 0 : index
      %c0_37 = arith.constant 0 : index
      %c0_38 = arith.constant 0 : index
      %43 = vector.load %arg7[%c0_36, %c0_37, %c0_38] : memref<1x1x64xf32, #tpu.memory_space<vmem>>, vector<1x1x64xf32>
      %44 = vector.shape_cast %43 : vector<1x1x64xf32> to vector<1x64xf32>
      %45 = vector.shape_cast %42 : vector<1x64xf32> to vector<1x1x64xf32>
      tpu.vector_store %arg7[%c0_36, %c0_37, %c0_38], %45 {strides = array<i32>} : memref<1x1x64xf32, #tpu.memory_space<vmem>>, vector<1x1x64xf32>,
      %c0_39 = arith.constant 0 : index
      %c0_40 = arith.constant 0 : index
      %46 = vector.load %arg4[%c0_39, %c0_40] : memref<1x64xf32, #tpu.memory_space<vmem>>, vector<1x64xf32>
      %47 = arith.mulf %35, %42 : vector<1x64xf32>
      %48 = arith.subf %46, %47 : vector<1x64xf32>
      %c0_41 = arith.constant 0 : index
      %c0_42 = arith.constant 0 : index
      %c0_43 = arith.constant 0 : index
      %49 = vector.load %arg8[%c0_41, %c0_42, %c0_43] : memref<1x1x64xf32, #tpu.memory_space<vmem>>, vector<1x1x64xf32>
      %50 = vector.shape_cast %49 : vector<1x1x64xf32> to vector<1x64xf32>
      %51 = vector.shape_cast %48 : vector<1x64xf32> to vector<1x1x64xf32>
      tpu.vector_store %arg8[%c0_41, %c0_42, %c0_43], %51 {strides = array<i32>} : memref<1x1x64xf32, #tpu.memory_space<vmem>>, vector<1x1x64xf32>,
    } else {
    }
    return
  }
  func.func @transform_0(%arg0: i32, %arg1: i32) -> (i32, i32, i32) {
    %c0_i32 = arith.constant 0 : i32
    %c0_i32_0 = arith.constant 0 : i32
    return %arg0, %arg1, %c0_i32 : i32, i32, i32
  }
  func.func @transform_1(%arg0: i32, %arg1: i32) -> (i32, i32) {
    %c0_i32 = arith.constant 0 : i32
    %c0_i32_0 = arith.constant 0 : i32
    %c0_i32_1 = arith.constant 0 : i32
    return %c0_i32, %c0_i32_0 : i32, i32
  }
  func.func @transform_2(%arg0: i32, %arg1: i32) -> (i32, i32) {
    %c0_i32 = arith.constant 0 : i32
    %c0_i32_0 = arith.constant 0 : i32
    %c0_i32_1 = arith.constant 0 : i32
    return %c0_i32, %c0_i32_0 : i32, i32
  }
  func.func @transform_3(%arg0: i32, %arg1: i32) -> (i32, i32) {
    %c0_i32 = arith.constant 0 : i32
    %c0_i32_0 = arith.constant 0 : i32
    %c0_i32_1 = arith.constant 0 : i32
    return %c0_i32, %c0_i32_0 : i32, i32
  }
  func.func @transform_4(%arg0: i32, %arg1: i32) -> (i32, i32) {
    %c0_i32 = arith.constant 0 : i32
    %c0_i32_0 = arith.constant 0 : i32
    %c0_i32_1 = arith.constant 0 : i32
    return %c0_i32, %c0_i32_0 : i32, i32
  }
  func.func @transform_5(%arg0: i32, %arg1: i32) -> (i32, i32, i32) {
    %c0_i32 = arith.constant 0 : i32
    %c0_i32_0 = arith.constant 0 : i32
    %c0_i32_1 = arith.constant 0 : i32
    return %arg0, %c0_i32, %c0_i32_0 : i32, i32, i32
  }
  func.func @transform_6(%arg0: i32, %arg1: i32) -> (i32, i32, i32) {
    %c0_i32 = arith.constant 0 : i32
    %c0_i32_0 = arith.constant 0 : i32
    %c0_i32_1 = arith.constant 0 : i32
    return %arg0, %c0_i32, %c0_i32_0 : i32, i32, i32
  }
}

module attributes {stable_mosaic.version = 11 : i64} {
  func.func @_kv_proj_kernel(%arg0: i32, %arg1: i32, %arg2: memref<1x1x64xf32, #tpu.memory_space<vmem>>, %arg3: memref<1x1x64xf32, #tpu.memory_space<vmem>>, %arg4: memref<1x64x64xbf16, #tpu.memory_space<vmem>>, %arg5: memref<64x128xbf16, #tpu.memory_space<vmem>>, %arg6: memref<1x128xf32, #tpu.memory_space<vmem>>, %arg7: memref<1x64x64xbf16, #tpu.memory_space<vmem>>, %arg8: memref<1x64x64xbf16, #tpu.memory_space<vmem>>) attributes {dimension_semantics = [#tpu.dimension_semantics<parallel>, #tpu.dimension_semantics<parallel>], iteration_bounds = array<i64: 2, 1>, scalar_prefetch = 0 : i64, scratch_operands = 0 : i64, tpu.core_type = #tpu.core_type<tc>, window_params = [{transform_indices = @transform_0, window_bounds = array<i64: 1, 1, 64>}, {transform_indices = @transform_1, window_bounds = array<i64: 1, 1, 64>}, {transform_indices = @transform_2, window_bounds = array<i64: 1, 64, 64>}, {pipeline_mode = #tpu.pipeline_mode<synchronous>, transform_indices = @transform_3, window_bounds = array<i64: 64, 128>}, {pipeline_mode = #tpu.pipeline_mode<synchronous>, transform_indices = @transform_4, window_bounds = array<i64: 1, 128>}, {transform_indices = @transform_5, window_bounds = array<i64: 1, 64, 64>}, {transform_indices = @transform_6, window_bounds = array<i64: 1, 64, 64>}]} {
    %c0 = arith.constant 0 : index
    %c0_0 = arith.constant 0 : index
    %c0_1 = arith.constant 0 : index
    %0 = vector.load %arg4[%c0, %c0_0, %c0_1] : memref<1x64x64xbf16, #tpu.memory_space<vmem>>, vector<1x64x64xbf16>
    %1 = vector.shape_cast %0 : vector<1x64x64xbf16> to vector<64x64xbf16>
    %2 = arith.extf %1 : vector<64x64xbf16> to vector<64x64xf32>
    %c0_2 = arith.constant 0 : index
    %c0_3 = arith.constant 0 : index
    %c0_4 = arith.constant 0 : index
    %3 = vector.load %arg2[%c0_2, %c0_3, %c0_4] : memref<1x1x64xf32, #tpu.memory_space<vmem>>, vector<1x1x64xf32>
    %4 = vector.shape_cast %3 : vector<1x1x64xf32> to vector<1x64xf32>
    %5 = vector.broadcast %4 : vector<1x64xf32> to vector<64x64xf32>
    %6 = arith.mulf %2, %5 : vector<64x64xf32>
    %c0_5 = arith.constant 0 : index
    %c0_6 = arith.constant 0 : index
    %c0_7 = arith.constant 0 : index
    %7 = vector.load %arg3[%c0_5, %c0_6, %c0_7] : memref<1x1x64xf32, #tpu.memory_space<vmem>>, vector<1x1x64xf32>
    %8 = vector.shape_cast %7 : vector<1x1x64xf32> to vector<1x64xf32>
    %9 = vector.broadcast %8 : vector<1x64xf32> to vector<64x64xf32>
    %10 = arith.addf %6, %9 : vector<64x64xf32>
    %11 = arith.truncf %10 : vector<64x64xf32> to vector<64x64xbf16>
    %c0_8 = arith.constant 0 : index
    %c0_9 = arith.constant 0 : index
    %12 = vector.load %arg5[%c0_8, %c0_9] : memref<64x128xbf16, #tpu.memory_space<vmem>>, vector<64x128xbf16>
    %cst = arith.constant dense<0.000000e+00> : vector<64x128xf32>
    %13 = tpu.matmul %11, %12, %cst {dimension_numbers = #tpu.dot_dimension_numbers<[1], [0], [0], [1], [0, 0, 1, 1], [], []>} : vector<64x64xbf16>, vector<64x128xbf16>, vector<64x128xf32> -> vector<64x128xf32>
    %c0_10 = arith.constant 0 : index
    %c0_11 = arith.constant 0 : index
    %14 = vector.load %arg6[%c0_10, %c0_11] : memref<1x128xf32, #tpu.memory_space<vmem>>, vector<1x128xf32>
    %15 = vector.broadcast %14 : vector<1x128xf32> to vector<64x128xf32>
    %16 = arith.addf %13, %15 : vector<64x128xf32>
    %17 = arith.truncf %16 : vector<64x128xf32> to vector<64x128xbf16>
    %18 = vector.extract_strided_slice %17 {offsets = [0, 0], sizes = [64, 64], strides = [1, 1]} : vector<64x128xbf16> to vector<64x64xbf16>
    %c0_12 = arith.constant 0 : index
    %c0_13 = arith.constant 0 : index
    %c0_14 = arith.constant 0 : index
    %19 = vector.load %arg7[%c0_12, %c0_13, %c0_14] : memref<1x64x64xbf16, #tpu.memory_space<vmem>>, vector<1x64x64xbf16>
    %20 = vector.shape_cast %19 : vector<1x64x64xbf16> to vector<64x64xbf16>
    %21 = vector.shape_cast %18 : vector<64x64xbf16> to vector<1x64x64xbf16>
    tpu.vector_store %arg7[%c0_12, %c0_13, %c0_14], %21 {strides = array<i32>} : memref<1x64x64xbf16, #tpu.memory_space<vmem>>, vector<1x64x64xbf16>,
    %22 = vector.extract_strided_slice %17 {offsets = [0, 64], sizes = [64, 64], strides = [1, 1]} : vector<64x128xbf16> to vector<64x64xbf16>
    %c0_15 = arith.constant 0 : index
    %c0_16 = arith.constant 0 : index
    %c0_17 = arith.constant 0 : index
    %23 = vector.load %arg8[%c0_15, %c0_16, %c0_17] : memref<1x64x64xbf16, #tpu.memory_space<vmem>>, vector<1x64x64xbf16>
    %24 = vector.shape_cast %23 : vector<1x64x64xbf16> to vector<64x64xbf16>
    %25 = vector.shape_cast %22 : vector<64x64xbf16> to vector<1x64x64xbf16>
    tpu.vector_store %arg8[%c0_15, %c0_16, %c0_17], %25 {strides = array<i32>} : memref<1x64x64xbf16, #tpu.memory_space<vmem>>, vector<1x64x64xbf16>,
    return
  }
  func.func @transform_0(%arg0: i32, %arg1: i32) -> (i32, i32, i32) {
    %c0_i32 = arith.constant 0 : i32
    %c0_i32_0 = arith.constant 0 : i32
    %c0_i32_1 = arith.constant 0 : i32
    return %arg0, %c0_i32, %c0_i32_0 : i32, i32, i32
  }
  func.func @transform_1(%arg0: i32, %arg1: i32) -> (i32, i32, i32) {
    %c0_i32 = arith.constant 0 : i32
    %c0_i32_0 = arith.constant 0 : i32
    %c0_i32_1 = arith.constant 0 : i32
    return %arg0, %c0_i32, %c0_i32_0 : i32, i32, i32
  }
  func.func @transform_2(%arg0: i32, %arg1: i32) -> (i32, i32, i32) {
    %c0_i32 = arith.constant 0 : i32
    %c0_i32_0 = arith.constant 0 : i32
    return %arg0, %arg1, %c0_i32 : i32, i32, i32
  }
  func.func @transform_3(%arg0: i32, %arg1: i32) -> (i32, i32) {
    %c0_i32 = arith.constant 0 : i32
    %c0_i32_0 = arith.constant 0 : i32
    %c0_i32_1 = arith.constant 0 : i32
    return %c0_i32, %c0_i32_0 : i32, i32
  }
  func.func @transform_4(%arg0: i32, %arg1: i32) -> (i32, i32) {
    %c0_i32 = arith.constant 0 : i32
    %c0_i32_0 = arith.constant 0 : i32
    %c0_i32_1 = arith.constant 0 : i32
    return %c0_i32, %c0_i32_0 : i32, i32
  }
  func.func @transform_5(%arg0: i32, %arg1: i32) -> (i32, i32, i32) {
    %c0_i32 = arith.constant 0 : i32
    %c0_i32_0 = arith.constant 0 : i32
    return %arg0, %arg1, %c0_i32 : i32, i32, i32
  }
  func.func @transform_6(%arg0: i32, %arg1: i32) -> (i32, i32, i32) {
    %c0_i32 = arith.constant 0 : i32
    %c0_i32_0 = arith.constant 0 : i32
    return %arg0, %arg1, %c0_i32 : i32, i32, i32
  }
}

module attributes {stable_mosaic.version = 11 : i64} {
  func.func @_flash_attn_kernel(%arg0: i32, %arg1: i32, %arg2: i32, %arg3: memref<1x1x64xf32, #tpu.memory_space<vmem>>, %arg4: memref<1x1x64xf32, #tpu.memory_space<vmem>>, %arg5: memref<1x64x64xbf16, #tpu.memory_space<vmem>>, %arg6: memref<1x64x64xbf16, #tpu.memory_space<vmem>>, %arg7: memref<1x64x64xbf16, #tpu.memory_space<vmem>>, %arg8: memref<64x64xbf16, #tpu.memory_space<vmem>>, %arg9: memref<1x64xf32, #tpu.memory_space<vmem>>, %arg10: memref<1x64x64xf32, #tpu.memory_space<vmem>>, %arg11: memref<64x64xbf16, #tpu.memory_space<vmem>>, %arg12: memref<64x1xf32, #tpu.memory_space<vmem>>, %arg13: memref<64x1xf32, #tpu.memory_space<vmem>>, %arg14: memref<64x64xf32, #tpu.memory_space<vmem>>) attributes {dimension_semantics = [#tpu.dimension_semantics<parallel>, #tpu.dimension_semantics<parallel>, #tpu.dimension_semantics<arbitrary>], iteration_bounds = array<i64: 2, 1, 1>, scalar_prefetch = 0 : i64, scratch_operands = 4 : i64, tpu.core_type = #tpu.core_type<tc>, window_params = [{transform_indices = @transform_0, window_bounds = array<i64: 1, 1, 64>}, {transform_indices = @transform_1, window_bounds = array<i64: 1, 1, 64>}, {transform_indices = @transform_2, window_bounds = array<i64: 1, 64, 64>}, {transform_indices = @transform_3, window_bounds = array<i64: 1, 64, 64>}, {transform_indices = @transform_4, window_bounds = array<i64: 1, 64, 64>}, {pipeline_mode = #tpu.pipeline_mode<synchronous>, transform_indices = @transform_5, window_bounds = array<i64: 64, 64>}, {pipeline_mode = #tpu.pipeline_mode<synchronous>, transform_indices = @transform_6, window_bounds = array<i64: 1, 64>}, {transform_indices = @transform_7, window_bounds = array<i64: 1, 64, 64>}]} {
    %c0_i32 = arith.constant 0 : i32
    %0 = arith.cmpi eq, %arg2, %c0_i32 : i32
    %1 = arith.extui %0 : i1 to i32
    %c0_i32_0 = arith.constant 0 : i32
    %2 = arith.cmpi ne, %1, %c0_i32_0 : i32
    scf.if %2 {
      %c0_25 = arith.constant 0 : index
      %c0_26 = arith.constant 0 : index
      %c0_27 = arith.constant 0 : index
      %36 = vector.load %arg5[%c0_25, %c0_26, %c0_27] : memref<1x64x64xbf16, #tpu.memory_space<vmem>>, vector<1x64x64xbf16>
      %37 = vector.shape_cast %36 : vector<1x64x64xbf16> to vector<64x64xbf16>
      %38 = arith.extf %37 : vector<64x64xbf16> to vector<64x64xf32>
      %c0_28 = arith.constant 0 : index
      %c0_29 = arith.constant 0 : index
      %c0_30 = arith.constant 0 : index
      %39 = vector.load %arg3[%c0_28, %c0_29, %c0_30] : memref<1x1x64xf32, #tpu.memory_space<vmem>>, vector<1x1x64xf32>
      %40 = vector.shape_cast %39 : vector<1x1x64xf32> to vector<1x64xf32>
      %41 = vector.broadcast %40 : vector<1x64xf32> to vector<64x64xf32>
      %42 = arith.mulf %38, %41 : vector<64x64xf32>
      %c0_31 = arith.constant 0 : index
      %c0_32 = arith.constant 0 : index
      %c0_33 = arith.constant 0 : index
      %43 = vector.load %arg4[%c0_31, %c0_32, %c0_33] : memref<1x1x64xf32, #tpu.memory_space<vmem>>, vector<1x1x64xf32>
      %44 = vector.shape_cast %43 : vector<1x1x64xf32> to vector<1x64xf32>
      %45 = vector.broadcast %44 : vector<1x64xf32> to vector<64x64xf32>
      %46 = arith.addf %42, %45 : vector<64x64xf32>
      %47 = arith.truncf %46 : vector<64x64xf32> to vector<64x64xbf16>
      %c0_34 = arith.constant 0 : index
      %c0_35 = arith.constant 0 : index
      %48 = vector.load %arg8[%c0_34, %c0_35] : memref<64x64xbf16, #tpu.memory_space<vmem>>, vector<64x64xbf16>
      %cst_36 = arith.constant dense<0.000000e+00> : vector<64x64xf32>
      %49 = tpu.matmul %47, %48, %cst_36 {dimension_numbers = #tpu.dot_dimension_numbers<[1], [0], [0], [1], [0, 0, 1, 1], [], []>} : vector<64x64xbf16>, vector<64x64xbf16>, vector<64x64xf32> -> vector<64x64xf32>
      %c0_37 = arith.constant 0 : index
      %c0_38 = arith.constant 0 : index
      %50 = vector.load %arg9[%c0_37, %c0_38] : memref<1x64xf32, #tpu.memory_space<vmem>>, vector<1x64xf32>
      %51 = vector.broadcast %50 : vector<1x64xf32> to vector<64x64xf32>
      %52 = arith.addf %49, %51 : vector<64x64xf32>
      %53 = arith.truncf %52 : vector<64x64xf32> to vector<64x64xbf16>
      %c0_39 = arith.constant 0 : index
      %c0_40 = arith.constant 0 : index
      %54 = vector.load %arg11[%c0_39, %c0_40] : memref<64x64xbf16, #tpu.memory_space<vmem>>, vector<64x64xbf16>
      tpu.vector_store %arg11[%c0_39, %c0_40], %53 {strides = array<i32>} : memref<64x64xbf16, #tpu.memory_space<vmem>>, vector<64x64xbf16>,
      %cst_41 = arith.constant 0xFF800000 : f32
      %55 = vector.broadcast %cst_41 : f32 to vector<64x1xf32>
      %c0_42 = arith.constant 0 : index
      %c0_43 = arith.constant 0 : index
      %56 = vector.load %arg12[%c0_42, %c0_43] : memref<64x1xf32, #tpu.memory_space<vmem>>, vector<64x1xf32>
      tpu.vector_store %arg12[%c0_42, %c0_43], %55 {strides = array<i32>} : memref<64x1xf32, #tpu.memory_space<vmem>>, vector<64x1xf32>,
      %cst_44 = arith.constant 0.000000e+00 : f32
      %57 = vector.broadcast %cst_44 : f32 to vector<64x1xf32>
      %c0_45 = arith.constant 0 : index
      %c0_46 = arith.constant 0 : index
      %58 = vector.load %arg13[%c0_45, %c0_46] : memref<64x1xf32, #tpu.memory_space<vmem>>, vector<64x1xf32>
      tpu.vector_store %arg13[%c0_45, %c0_46], %57 {strides = array<i32>} : memref<64x1xf32, #tpu.memory_space<vmem>>, vector<64x1xf32>,
      %cst_47 = arith.constant 0.000000e+00 : f32
      %59 = vector.broadcast %cst_47 : f32 to vector<64x64xf32>
      %c0_48 = arith.constant 0 : index
      %c0_49 = arith.constant 0 : index
      %60 = vector.load %arg14[%c0_48, %c0_49] : memref<64x64xf32, #tpu.memory_space<vmem>>, vector<64x64xf32>
      tpu.vector_store %arg14[%c0_48, %c0_49], %59 {strides = array<i32>} : memref<64x64xf32, #tpu.memory_space<vmem>>, vector<64x64xf32>,
    } else {
    }
    %c0 = arith.constant 0 : index
    %c0_1 = arith.constant 0 : index
    %3 = vector.load %arg11[%c0, %c0_1] : memref<64x64xbf16, #tpu.memory_space<vmem>>, vector<64x64xbf16>
    %c0_2 = arith.constant 0 : index
    %c0_3 = arith.constant 0 : index
    %c0_4 = arith.constant 0 : index
    %4 = vector.load %arg6[%c0_2, %c0_3, %c0_4] : memref<1x64x64xbf16, #tpu.memory_space<vmem>>, vector<1x64x64xbf16>
    %5 = vector.shape_cast %4 : vector<1x64x64xbf16> to vector<64x64xbf16>
    %cst = arith.constant dense<0.000000e+00> : vector<64x64xf32>
    %6 = tpu.matmul %3, %5, %cst {dimension_numbers = #tpu.dot_dimension_numbers<[1], [1], [0], [0], [0, 0, 1, 0], [], []>} : vector<64x64xbf16>, vector<64x64xbf16>, vector<64x64xf32> -> vector<64x64xf32>
    %c0_5 = arith.constant 0 : index
    %c0_6 = arith.constant 0 : index
    %7 = vector.load %arg12[%c0_5, %c0_6] : memref<64x1xf32, #tpu.memory_space<vmem>>, vector<64x1xf32>
    %cst_7 = arith.constant dense<0xFF800000> : vector<64xf32>
    %8 = vector.multi_reduction <maximumf>, %6, %cst_7 [1] : vector<64x64xf32> to vector<64xf32>
    %9 = vector.shape_cast %8 : vector<64xf32> to vector<64x1xf32>
    %10 = arith.maximumf %7, %9 : vector<64x1xf32>
    %11 = arith.subf %7, %10 : vector<64x1xf32>
    %12 = math.exp %11 : vector<64x1xf32>
    %13 = vector.broadcast %10 : vector<64x1xf32> to vector<64x64xf32>
    %14 = arith.subf %6, %13 : vector<64x64xf32>
    %15 = arith.truncf %14 : vector<64x64xf32> to vector<64x64xbf16>
    %16 = math.exp %15 : vector<64x64xbf16>
    %c0_8 = arith.constant 0 : index
    %c0_9 = arith.constant 0 : index
    %17 = vector.load %arg13[%c0_8, %c0_9] : memref<64x1xf32, #tpu.memory_space<vmem>>, vector<64x1xf32>
    %18 = arith.mulf %12, %17 : vector<64x1xf32>
    %19 = arith.extf %16 : vector<64x64xbf16> to vector<64x64xf32>
    %cst_10 = arith.constant dense<0.000000e+00> : vector<64xf32>
    %20 = vector.multi_reduction <add>, %19, %cst_10 [1] : vector<64x64xf32> to vector<64xf32>
    %21 = vector.shape_cast %20 : vector<64xf32> to vector<64x1xf32>
    %22 = arith.addf %18, %21 : vector<64x1xf32>
    %c0_11 = arith.constant 0 : index
    %c0_12 = arith.constant 0 : index
    %23 = vector.load %arg13[%c0_11, %c0_12] : memref<64x1xf32, #tpu.memory_space<vmem>>, vector<64x1xf32>
    tpu.vector_store %arg13[%c0_11, %c0_12], %22 {strides = array<i32>} : memref<64x1xf32, #tpu.memory_space<vmem>>, vector<64x1xf32>,
    %c0_13 = arith.constant 0 : index
    %c0_14 = arith.constant 0 : index
    %24 = vector.load %arg14[%c0_13, %c0_14] : memref<64x64xf32, #tpu.memory_space<vmem>>, vector<64x64xf32>
    %25 = vector.broadcast %12 : vector<64x1xf32> to vector<64x64xf32>
    %26 = arith.mulf %25, %24 : vector<64x64xf32>
    %c0_15 = arith.constant 0 : index
    %c0_16 = arith.constant 0 : index
    %c0_17 = arith.constant 0 : index
    %27 = vector.load %arg7[%c0_15, %c0_16, %c0_17] : memref<1x64x64xbf16, #tpu.memory_space<vmem>>, vector<1x64x64xbf16>
    %28 = vector.shape_cast %27 : vector<1x64x64xbf16> to vector<64x64xbf16>
    %cst_18 = arith.constant dense<0.000000e+00> : vector<64x64xf32>
    %29 = tpu.matmul %16, %28, %cst_18 {dimension_numbers = #tpu.dot_dimension_numbers<[1], [0], [0], [1], [0, 0, 1, 1], [], []>} : vector<64x64xbf16>, vector<64x64xbf16>, vector<64x64xf32> -> vector<64x64xf32>
    %30 = arith.addf %26, %29 : vector<64x64xf32>
    %c0_19 = arith.constant 0 : index
    %c0_20 = arith.constant 0 : index
    %31 = vector.load %arg14[%c0_19, %c0_20] : memref<64x64xf32, #tpu.memory_space<vmem>>, vector<64x64xf32>
    tpu.vector_store %arg14[%c0_19, %c0_20], %30 {strides = array<i32>} : memref<64x64xf32, #tpu.memory_space<vmem>>, vector<64x64xf32>,
    %c0_21 = arith.constant 0 : index
    %c0_22 = arith.constant 0 : index
    %32 = vector.load %arg12[%c0_21, %c0_22] : memref<64x1xf32, #tpu.memory_space<vmem>>, vector<64x1xf32>
    tpu.vector_store %arg12[%c0_21, %c0_22], %10 {strides = array<i32>} : memref<64x1xf32, #tpu.memory_space<vmem>>, vector<64x1xf32>,
    %c0_i32_23 = arith.constant 0 : i32
    %33 = arith.cmpi eq, %arg2, %c0_i32_23 : i32
    %34 = arith.extui %33 : i1 to i32
    %c0_i32_24 = arith.constant 0 : i32
    %35 = arith.cmpi ne, %34, %c0_i32_24 : i32
    scf.if %35 {
      %c0_25 = arith.constant 0 : index
      %c0_26 = arith.constant 0 : index
      %36 = vector.load %arg13[%c0_25, %c0_26] : memref<64x1xf32, #tpu.memory_space<vmem>>, vector<64x1xf32>
      %37 = tpu.reciprocal %36 {approx = true} : vector<64x1xf32> -> vector<64x1xf32>
      %c0_27 = arith.constant 0 : index
      %c0_28 = arith.constant 0 : index
      %c0_29 = arith.constant 0 : index
      %38 = vector.load %arg5[%c0_27, %c0_28, %c0_29] : memref<1x64x64xbf16, #tpu.memory_space<vmem>>, vector<1x64x64xbf16>
      %39 = vector.shape_cast %38 : vector<1x64x64xbf16> to vector<64x64xbf16>
      %40 = arith.extf %39 : vector<64x64xbf16> to vector<64x64xf32>
      %c0_30 = arith.constant 0 : index
      %c0_31 = arith.constant 0 : index
      %41 = vector.load %arg14[%c0_30, %c0_31] : memref<64x64xf32, #tpu.memory_space<vmem>>, vector<64x64xf32>
      %42 = vector.broadcast %37 : vector<64x1xf32> to vector<64x64xf32>
      %43 = arith.mulf %41, %42 : vector<64x64xf32>
      %44 = arith.addf %40, %43 : vector<64x64xf32>
      %c0_32 = arith.constant 0 : index
      %c0_33 = arith.constant 0 : index
      %c0_34 = arith.constant 0 : index
      %45 = vector.load %arg10[%c0_32, %c0_33, %c0_34] : memref<1x64x64xf32, #tpu.memory_space<vmem>>, vector<1x64x64xf32>
      %46 = vector.shape_cast %45 : vector<1x64x64xf32> to vector<64x64xf32>
      %47 = vector.shape_cast %44 : vector<64x64xf32> to vector<1x64x64xf32>
      tpu.vector_store %arg10[%c0_32, %c0_33, %c0_34], %47 {strides = array<i32>} : memref<1x64x64xf32, #tpu.memory_space<vmem>>, vector<1x64x64xf32>,
    } else {
    }
    return
  }
  func.func @transform_0(%arg0: i32, %arg1: i32, %arg2: i32) -> (i32, i32, i32) {
    %c0_i32 = arith.constant 0 : i32
    %c0_i32_0 = arith.constant 0 : i32
    %c0_i32_1 = arith.constant 0 : i32
    return %arg0, %c0_i32, %c0_i32_0 : i32, i32, i32
  }
  func.func @transform_1(%arg0: i32, %arg1: i32, %arg2: i32) -> (i32, i32, i32) {
    %c0_i32 = arith.constant 0 : i32
    %c0_i32_0 = arith.constant 0 : i32
    %c0_i32_1 = arith.constant 0 : i32
    return %arg0, %c0_i32, %c0_i32_0 : i32, i32, i32
  }
  func.func @transform_2(%arg0: i32, %arg1: i32, %arg2: i32) -> (i32, i32, i32) {
    %c0_i32 = arith.constant 0 : i32
    %c0_i32_0 = arith.constant 0 : i32
    return %arg0, %arg1, %c0_i32 : i32, i32, i32
  }
  func.func @transform_3(%arg0: i32, %arg1: i32, %arg2: i32) -> (i32, i32, i32) {
    %c0_i32 = arith.constant 0 : i32
    %c0_i32_0 = arith.constant 0 : i32
    return %arg0, %arg2, %c0_i32 : i32, i32, i32
  }
  func.func @transform_4(%arg0: i32, %arg1: i32, %arg2: i32) -> (i32, i32, i32) {
    %c0_i32 = arith.constant 0 : i32
    %c0_i32_0 = arith.constant 0 : i32
    return %arg0, %arg2, %c0_i32 : i32, i32, i32
  }
  func.func @transform_5(%arg0: i32, %arg1: i32, %arg2: i32) -> (i32, i32) {
    %c0_i32 = arith.constant 0 : i32
    %c0_i32_0 = arith.constant 0 : i32
    %c0_i32_1 = arith.constant 0 : i32
    return %c0_i32, %c0_i32_0 : i32, i32
  }
  func.func @transform_6(%arg0: i32, %arg1: i32, %arg2: i32) -> (i32, i32) {
    %c0_i32 = arith.constant 0 : i32
    %c0_i32_0 = arith.constant 0 : i32
    %c0_i32_1 = arith.constant 0 : i32
    return %c0_i32, %c0_i32_0 : i32, i32
  }
  func.func @transform_7(%arg0: i32, %arg1: i32, %arg2: i32) -> (i32, i32, i32) {
    %c0_i32 = arith.constant 0 : i32
    %c0_i32_0 = arith.constant 0 : i32
    return %arg0, %arg1, %c0_i32 : i32, i32, i32
  }
}

</mosaic_0001>

<bundles_post_ra>
// kernel: nonlocal_block.4
= control target key start
LH: loop header
LB: loop body
LE: loop exit
PB: predicated region body
PF: predicated region fallthrough
CT: control target
= control target key end

     0   :  { %s922_s21 = smov 0   ;;  %s924_s22 = smov 0   ;;  %s1014_s0 = inlined_call_operand.vmem [shape: f32[2,1,64], index: 0, kind: input, shape index: {}]   ;;  %s1015_s1 = inlined_call_operand.vmem [shape: f32[2,1,64], index: 1, kind: input, shape index: {}]   ;;  %s1016_s2 = inlined_call_operand.vmem [shape: bf16[2,64,64], index: 2, kind: input, shape index: {}]   ;;  %s1017_s3 = inlined_call_operand.vmem [shape: bf16[64,128], index: 3, kind: input, shape index: {}]   ;;  %s1018_s4 = inlined_call_operand.vmem [shape: f32[1,128], index: 4, kind: input, shape index: {}]   ;;  %s1019_s5 = inlined_call_operand.vmem [shape: bf16[2,64,64], index: 5, kind: output, shape index: {0}]   ;;  %s1020_s6 = inlined_call_operand.vmem [shape: bf16[2,64,64], index: 6, kind: output, shape index: {1}]  }
   0x1   :  { %s926_s23 = smov 0  }
   0x2 LB: > { %s29_s24 = sadd.s32 1, %s880_s22  ;;  %p743_p0 = scmp.ge.s32.totalorder %s884_s23, 1  ;;  %s884_s23 = sphi %s926_s23, %s17_s23   ;;  %s880_s22 = sphi %s924_s22, %s1022_s22   ;;  %s876_s21 = sphi %s922_s21, %s1021_s21  }
   0x3   : > { %p31_p1 = scmp.ge.s32.totalorder %s29_s24, 2  ;;  %p254_p2 = scmp.lt.s32.totalorder %s884_s23, 3 }
   0x5   : > { %s1024_s24 = smov (%p31_p1, %s29_s24), 0  ;;  %p255_p3 = pnand %p743_p0, %p254_p2 }
   0x6   : > { %v858_v0 = vld [vmem:[%s1017_s3] sm:$0xff] (!%p255_p3)   ;;  %p307_p4 = scmp.lt.s32.totalorder (!%p255_p3), %s876_s21, 1  ;;  %v859_v1 = vld [vmem:[%s1017_s3 + $0x8] sm:$0xff] (!%p255_p3)   ;;  %v860_v2 = vld [vmem:[%s1017_s3 + $0x10] sm:$0xff] (!%p255_p3)   ;;  %vm433_vm0 = vcmask (!%p255_p3), 523264   ;;  %vm543_vm1 = vcmask (!%p255_p3), 519168  }
   0x7   : > { %258 = sbr.rel (%p255_p3) target bundleno = 372 (0x174), region = 40  ;;  %809 = vmatprep.subr.bf16.mxu0 (!%p255_p3), %v858_v0  ;;  %825 = vmatprep.subr.bf16.mxu1 (!%p255_p3), %v858_v0  ;;  %v861_v7 = vld [vmem:[%s1017_s3 + $0x18] sm:$0xff] (!%p255_p3)   ;;  %v752_v38 = vld [vmem:[%s1018_s4] ss:$0 sm:$0xff] (!%p255_p3)  ;;  %s886_s27 = smov (!%p255_p3), 64  }
   0x8   : > { %810 = vmatpush3.bf16.msra.mxu0 (!%p255_p3), %v858_v0  ;;  %829 = vmatpush3.bf16.msra.mxu1 (!%p255_p3), %v858_v0 }
   0x9   : > { %811 = vmatprep.subr.bf16.mxu0 (!%p255_p3), %v859_v1  ;;  %826 = vmatprep.subr.bf16.mxu1 (!%p255_p3), %v859_v1 }
   0xc   : > { %812 = vmatpush3.bf16.msra.mxu0 (!%p255_p3), %v859_v1  ;;  %830 = vmatpush3.bf16.msra.mxu1 (!%p255_p3), %v859_v1 }
   0xd   : > { %813 = vmatprep.subr.bf16.mxu0 (!%p255_p3), %v860_v2  ;;  %827 = vmatprep.subr.bf16.mxu1 (!%p255_p3), %v860_v2 }
   0xe   : > { %s1026_s21 = smov (!%p307_p4, %s876_s21), 1 }
   0xf   : > { %s309_s9 = scalar_lea.vmem %s1014_s0, %s1026_s21  ;;  %s952_s10 = sshll.u32 %s1026_s21, 5 }
  0x10   : > { %s312_s13 = scalar_lea.vmem %s1015_s1, %s1026_s21  ;;  %s321_s16 = scalar_lea.vmem %s1016_s2, %s952_s10  ;;  %v750_v3 = vld [vmem:[%s309_s9] ss:$0 sm:$0xff]  ;;  %814 = vmatpush3.bf16.msra.mxu0 %v860_v2  ;;  %831 = vmatpush3.bf16.msra.mxu1 %v860_v2 }
  0x11   : > { %v783_v4 = vld [vmem:[%s321_s16] sm:$0xff]   ;;  %v798_v5 = vld [vmem:[%s321_s16 + $0x8] sm:$0xff]   ;;  %v799_v6 = vld [vmem:[%s321_s16 + $0x10] sm:$0xff]   ;;  %815 = vmatprep.subr.bf16.mxu0 %v861_v7  ;;  %828 = vmatprep.subr.bf16.mxu1 %v861_v7  ;;  %s975_s26 = scalar_lea.vmem %s1019_s5, %s952_s10  ;;  %s341_s30 = scalar_lea.vmem %s1020_s6, %s952_s10 }
  0x12   : > { %v784_v8 = vunpack.c.l.bf16 %v783_v4  ;;  %v785_v9 = vunpack.c.h.bf16 %v783_v4  ;;  %v788_v10 = vunpack.c.l.bf16 %v798_v5  ;;  %v789_v11 = vunpack.c.h.bf16 %v798_v5  ;;  %v800_v12 = vld [vmem:[%s321_s16 + $0x18] sm:$0xff]   ;;  %v751_v13 = vld [vmem:[%s312_s13] ss:$0 sm:$0xff] }
  0x13   : > { %v792_v14 = vunpack.c.l.bf16 %v799_v6  ;;  %v793_v15 = vunpack.c.h.bf16 %v799_v6  ;;  %v796_v16 = vunpack.c.l.bf16 %v800_v12  ;;  %v797_v17 = vunpack.c.h.bf16 %v800_v12 }
  0x14   : > { %v367_v18 = vmul.f32 %v784_v8, %v750_v3  ;;  %v368_v19 = vmul.f32 %v785_v9, %v750_v3  ;;  %v369_v20 = vmul.f32 %v788_v10, %v750_v3  ;;  %v370_v21 = vmul.f32 %v789_v11, %v750_v3  ;;  %816 = vmatpush3.bf16.msra.mxu0 %v861_v7 }
  0x15   : > { %v371_v22 = vmul.f32 %v792_v14, %v750_v3  ;;  %v372_v23 = vmul.f32 %v793_v15, %v750_v3  ;;  %v373_v24 = vmul.f32 %v796_v16, %v750_v3  ;;  %v374_v31 = vmul.f32 %v797_v17, %v750_v3  ;;  %832 = vmatpush3.bf16.msra.mxu1 %v861_v7 }
  0x16   : > { %v382_v25 = vadd.f32 %v751_v13, %v367_v18  ;;  %v383_v26 = vadd.f32 %v751_v13, %v368_v19  ;;  %v384_v27 = vadd.f32 %v751_v13, %v369_v20  ;;  %v385_v28 = vadd.f32 %v751_v13, %v370_v21 }
  0x17   : > { %v386_v29 = vadd.f32 %v751_v13, %v371_v22  ;;  %v387_v30 = vadd.f32 %v751_v13, %v372_v23  ;;  %v388_v33 = vadd.f32 %v751_v13, %v373_v24  ;;  %v389_v36 = vadd.f32 %v751_v13, %v374_v31 }
  0x18   : > { %v390_v32 = vpack.c.bf16 %v383_v26, %v382_v25  ;;  %v391_v34 = vpack.c.bf16 %v385_v28, %v384_v27 }
  0x19   : > { %v392_v35 = vpack.c.bf16 %v387_v30, %v386_v29  ;;  %v393_v37 = vpack.c.bf16 %v389_v36, %v388_v33 }
  0x1a   : > { %817 = vmatprep.mubr.msk.bf16.mxu0 %vm433_vm0, %v390_v32 }
  0x1b   : > { %821 = vmatprep.mubr.msk.bf16.mxu1 %vm433_vm0, %v392_v35  ;;  %818 = vmatmul.mubr.msk.bf16.vlgmr.msra.gmra.mrb[0].mxu0 %vm433_vm0, %v391_v34 }
  0x1c   : > { %822 = vmatmul.mubr.msk.bf16.vlgmr.msra.gmra.mrb[0].mxu1 %vm433_vm0, %v393_v37 }
  0xee   : > { %v819_v39 = vpop.f32.mrb[0].mxu0 }
  0xef   : > { %v489_v40 = vadd.f32 %v819_v39, %v752_v38  ;;  %v480_v41 = vpop.f32.mrb[1].mxu0  ;;  %v823_v42 = vpop.f32.mrb[0].mxu1 }
  0xf0   : > { %v481_v43 = vadd.f32 %v752_v38, %v480_v41  ;;  %v505_v44 = vadd.f32 %v823_v42, %v752_v38  ;;  %v820_v45 = vpop.f32.mrb[2].mxu0  ;;  %v496_v46 = vpop.f32.mrb[1].mxu1 }
  0xf1   : > { %v776_v47 = vpack.c.bf16 %v489_v40, %v489_v40  ;;  %v492_v48 = vadd.f32 %v820_v45, %v752_v38  ;;  %v497_v49 = vadd.f32 %v752_v38, %v496_v46  ;;  %v483_v50 = vpop.f32.mrb[3].mxu0  ;;  %v824_v51 = vpop.f32.mrb[2].mxu1 }
  0xf2   : > { %v774_v52 = vpack.c.bf16 %v481_v43, %v481_v43  ;;  %v780_v53 = vpack.c.bf16 %v505_v44, %v505_v44  ;;  %v484_v54 = vadd.f32 %v752_v38, %v483_v50  ;;  %v508_v55 = vadd.f32 %v824_v51, %v752_v38  ;;  %v499_v56 = vpop.f32.mrb[3].mxu1 }
  0xf3   : > { %546 = vst.msk [vmem:[%s975_s26 + $0x8] sm:$0xf] %vm543_vm1, %v776_v47  ;;  %v777_v57 = vpack.c.bf16 %v492_v48, %v492_v48  ;;  %v778_v58 = vpack.c.bf16 %v497_v49, %v497_v49  ;;  %v500_v59 = vadd.f32 %v752_v38, %v499_v56  ;;  %556 = vrot.lane.b32.xlu1 %v776_v47, %s886_s27 }
  0xf4   : > { %544 = vst.msk [vmem:[%s975_s26] sm:$0xf] %vm543_vm1, %v774_v52  ;;  %550 = vst.msk [vmem:[%s975_s26 + $0x18] sm:$0xf] %vm543_vm1, %v780_v53  ;;  %v775_v60 = vpack.c.bf16 %v484_v54, %v484_v54  ;;  %v781_v61 = vpack.c.bf16 %v508_v55, %v508_v55  ;;  %552 = vrot.lane.b32.xlu0 %v774_v52, %s886_s27 }
  0xf5   : > { %547 = vst.msk [vmem:[%s975_s26 + $0xc] sm:$0xf] %vm543_vm1, %v777_v57  ;;  %548 = vst.msk [vmem:[%s975_s26 + $0x10] sm:$0xf] %vm543_vm1, %v778_v58  ;;  %v779_v62 = vpack.c.bf16 %v500_v59, %v500_v59 }
  0xf6   : > { %545 = vst.msk [vmem:[%s975_s26 + $0x4] sm:$0xf] %vm543_vm1, %v775_v60  ;;  %551 = vst.msk [vmem:[%s975_s26 + $0x1c] sm:$0xf] %vm543_vm1, %v781_v61 }
  0xf7   : > { %549 = vst.msk [vmem:[%s975_s26 + $0x14] sm:$0xf] %vm543_vm1, %v779_v62  ;;  %558 = vrot.lane.b32.xlu1 %v777_v57, %s886_s27 }
  0xf8   : > { %560 = vrot.lane.b32.xlu0 %v778_v58, %s886_s27 }
  0xfb   : > { %562 = vrot.lane.b32.xlu1 %v779_v62, %s886_s27 }
  0xfc   : > { %554 = vrot.lane.b32.xlu0 %v775_v60, %s886_s27 }
  0xff   : > { %566 = vrot.lane.b32.xlu1 %v781_v61, %s886_s27 }
 0x100   : > { %564 = vrot.lane.b32.xlu0 %v780_v53, %s886_s27 }
 0x165   : > { %v557_v63 = vpop.permute.xlu1 %556 }
 0x166   : > { %578 = vst.msk [vmem:[%s341_s30 + $0x8] sm:$0xf] %vm543_vm1, %v557_v63  ;;  %v553_v0 = vpop.permute.xlu0 %552 }
 0x167   : > { %576 = vst.msk [vmem:[%s341_s30] sm:$0xf] %vm543_vm1, %v553_v0 }
 0x169   : > { %v559_v1 = vpop.permute.xlu1 %558 }
 0x16a   : > { %579 = vst.msk [vmem:[%s341_s30 + $0xc] sm:$0xf] %vm543_vm1, %v559_v1  ;;  %v561_v2 = vpop.permute.xlu0 %560 }
 0x16b   : > { %580 = vst.msk [vmem:[%s341_s30 + $0x10] sm:$0xf] %vm543_vm1, %v561_v2 }
 0x16d   : > { %v563_v3 = vpop.permute.xlu1 %562 }
 0x16e   : > { %581 = vst.msk [vmem:[%s341_s30 + $0x14] sm:$0xf] %vm543_vm1, %v563_v3  ;;  %v555_v4 = vpop.permute.xlu0 %554 }
 0x16f   : > { %577 = vst.msk [vmem:[%s341_s30 + $0x4] sm:$0xf] %vm543_vm1, %v555_v4 }
 0x171   : > { %v567_v5 = vpop.permute.xlu1 %566 }
 0x172   : > { %583 = vst.msk [vmem:[%s341_s30 + $0x1c] sm:$0xf] %vm543_vm1, %v567_v5  ;;  %v565_v6 = vpop.permute.xlu0 %564 }
 0x173   : > { %582 = vst.msk [vmem:[%s341_s30 + $0x18] sm:$0xf] %vm543_vm1, %v565_v6 }
 0x174 PF: > { %s17_s23 = sadd.s32 1, %s884_s23   ;;  %s1021_s21 = smov %s880_s22 }
 0x175   : > { %p14_p5 = scmp.ge.s32.totalorder %s17_s23, 4   ;;  %s1022_s22 = smov %s1024_s24 }
 0x177   :  { %16 = sbr.rel (!%p14_p5) target bundleno = 2 (0x2), region = 88 }

// kernel: nonlocal_block.3
= control target key start
LH: loop header
LB: loop body
LE: loop exit
PB: predicated region body
PF: predicated region fallthrough
CT: control target
= control target key end

     0   :  { %s1024_s21 = smov 0   ;;  %s1026_s22 = smov 0   ;;  %s1153_s0 = inlined_call_operand.vmem [shape: bf16[2,64,64], index: 0, kind: input, shape index: {}]   ;;  %s1154_s1 = inlined_call_operand.vmem [shape: f32[1,64], index: 1, kind: input, shape index: {}]   ;;  %s1155_s2 = inlined_call_operand.vmem [shape: f32[1,64], index: 2, kind: input, shape index: {}]   ;;  %s1156_s3 = inlined_call_operand.vmem [shape: f32[64,32], index: 3, kind: input, shape index: {}]   ;;  %s1157_s4 = inlined_call_operand.vmem [shape: f32[32,64], index: 4, kind: input, shape index: {}]   ;;  %s1158_s5 = inlined_call_operand.vmem [shape: f32[2,1,64], index: 5, kind: output, shape index: {0}]   ;;  %s1159_s6 = inlined_call_operand.vmem [shape: f32[2,1,64], index: 6, kind: output, shape index: {1}]  }
   0x1   :  { %s1028_s23 = smov 0  }
   0x2 LB: > { %s29_s24 = sadd.s32 1, %s980_s22  ;;  %p780_p0 = scmp.ge.s32.totalorder %s984_s23, 1  ;;  %s984_s23 = sphi %s1028_s23, %s17_s23   ;;  %s980_s22 = sphi %s1026_s22, %s1161_s22   ;;  %s976_s21 = sphi %s1024_s21, %s1160_s21  }
   0x3   : > { %p31_p1 = scmp.ge.s32.totalorder %s29_s24, 2  ;;  %p234_p2 = scmp.lt.s32.totalorder %s984_s23, 3 }
   0x5   : > { %s1163_s24 = smov (%p31_p1, %s29_s24), 0  ;;  %p235_p3 = pnand %p780_p0, %p234_p2 }
   0x6   : > { %v370_v0 = vld [vmem:[%s1156_s3] sm:$0xff] (!%p235_p3)  ;;  %v371_v1 = vld [vmem:[%s1156_s3 + $0x8] sm:$0xff] (!%p235_p3)  ;;  %v372_v2 = vld [vmem:[%s1156_s3 + $0x10] sm:$0xff] (!%p235_p3)  ;;  %p270_p4 = scmp.lt.s32.totalorder (!%p235_p3), %s976_s21, 1  ;;  %vm289_vm0 = vcmask (!%p235_p3), 516096   ;;  %v986_v3 = vmov (!%p235_p3), 0.0|0.0  }
   0x7   : > { %238 = sbr.rel (%p235_p3) target bundleno = 510 (0x1fe), region = 40  ;;  %897 = vmatprep.subr.bf16.mxu0 (!%p235_p3), %v986_v3  ;;  %v898_v4 = vpack.c.bf16 (!%p235_p3), %v371_v1, %v370_v0  ;;  %909 = vmatprep.subr.bf16.mxu1 (!%p235_p3), %v986_v3  ;;  %v373_v5 = vld [vmem:[%s1156_s3 + $0x18] sm:$0xff] (!%p235_p3)  ;;  %v987_v6 = vmov (!%p235_p3), 0.0   ;;  %vm988_vm1 = vmmov (!%p235_p3), 0   ;;  %v374_v8 = vld [vmem:[%s1156_s3 + $0x20] sm:$0xff] (!%p235_p3)  ;;  %v375_v9 = vld [vmem:[%s1156_s3 + $0x28] sm:$0xff] (!%p235_p3) }
   0x8   : > { %290 = vst.msk [vmem:[#allocation2] sm:$0x1] (!%p235_p3), %vm289_vm0, %v987_v6  ;;  %291 = vst.msk [vmem:[#allocation3] sm:$0x1] (!%p235_p3), %vm289_vm0, %v987_v6  ;;  %853 = vmatprep.mubr.msk.f32.mxu0 (!%p235_p3), %vm988_vm1, %v987_v6  ;;  %872 = vmatprep.mubr.msk.f32.mxu1 (!%p235_p3), %vm988_vm1, %v987_v6  ;;  %v901_v7 = vpack.c.bf16 (!%p235_p3), %v373_v5, %v372_v2  ;;  %v904_v10 = vpack.c.bf16 (!%p235_p3), %v375_v9, %v374_v8  ;;  %vm309_vm2 = vcmask (!%p235_p3), 523264   ;;  %v376_v14 = vld [vmem:[%s1156_s3 + $0x30] sm:$0xff] (!%p235_p3) }
   0x9   : > { %899 = vmatpush3.bf16.msra.mxu0 (!%p235_p3), %v898_v4  ;;  %911 = vmatpush3.bf16.msra.mxu1 (!%p235_p3), %v898_v4  ;;  %v377_v15 = vld [vmem:[%s1156_s3 + $0x38] sm:$0xff] (!%p235_p3)  ;;  %vm535_vm3 = vcmask (!%p235_p3), 261120  }
   0xa   : > { %900 = vmatprep.subr.bf16.mxu0 (!%p235_p3), %v986_v3  ;;  %912 = vmatprep.subr.bf16.mxu1 (!%p235_p3), %v986_v3  ;;  %v907_v24 = vpack.c.bf16 (!%p235_p3), %v377_v15, %v376_v14 }
   0xd   : > { %902 = vmatpush3.bf16.msra.mxu0 (!%p235_p3), %v901_v7  ;;  %914 = vmatpush3.bf16.msra.mxu1 (!%p235_p3), %v901_v7 }
   0xe   : > { %s1165_s21 = smov (!%p270_p4, %s976_s21), 1  ;;  %903 = vmatprep.subr.bf16.mxu0 %v986_v3  ;;  %915 = vmatprep.subr.bf16.mxu1 %v986_v3 }
   0xf   : > { %s789_s13 = sshll.u32 %s1165_s21, 5  ;;  %v308_v9 = vld [vmem:[#allocation2] sm:$0x1]  ;;  %v334_v15 = vld [vmem:[#allocation3] sm:$0x1]  ;;  %s284_s18 = scalar_lea.vmem %s1159_s6, %s1165_s21 }
  0x10   : > { %s277_s16 = scalar_lea.vmem %s1153_s0, %s789_s13  ;;  %s281_s13 = scalar_lea.vmem %s1158_s5, %s1165_s21 }
  0x11   : > { %v791_v11 = vld [vmem:[%s277_s16] sm:$0xff]   ;;  %v806_v12 = vld [vmem:[%s277_s16 + $0x8] sm:$0xff]   ;;  %v807_v13 = vld [vmem:[%s277_s16 + $0x10] sm:$0xff]   ;;  %905 = vmatpush3.bf16.msra.mxu0 %v904_v10  ;;  %917 = vmatpush3.bf16.msra.mxu1 %v904_v10 }
  0x12   : > { %v792_v16 = vunpack.c.l.bf16 %v791_v11  ;;  %v793_v17 = vunpack.c.h.bf16 %v791_v11  ;;  %v796_v18 = vunpack.c.l.bf16 %v806_v12  ;;  %v797_v19 = vunpack.c.h.bf16 %v806_v12  ;;  %v808_v26 = vld [vmem:[%s277_s16 + $0x18] sm:$0xff]   ;;  %906 = vmatprep.subr.bf16.mxu0 %v986_v3  ;;  %918 = vmatprep.subr.bf16.mxu1 %v986_v3 }
  0x13   : > { %v800_v20 = vunpack.c.l.bf16 %v807_v13  ;;  %v801_v25 = vunpack.c.h.bf16 %v807_v13  ;;  %v804_v34 = vunpack.c.l.bf16 %v808_v26  ;;  %v805_v41 = vunpack.c.h.bf16 %v808_v26 }
  0x14   : > { %v310_v21 = vsel %vm309_vm2, %v792_v16, 0.0  ;;  %v311_v22 = vsel %vm309_vm2, %v793_v17, 0.0  ;;  %v313_v23 = vsel %vm309_vm2, %v796_v18, 0.0  ;;  %v315_v28 = vsel %vm309_vm2, %v797_v19, 0.0 }
  0x15   : > { %v312_v27 = vadd.f32 %v311_v22, %v310_v21  ;;  %v335_v29 = vmul.f32 %v792_v16, %v792_v16  ;;  %v336_v30 = vmul.f32 %v793_v17, %v793_v17  ;;  %v337_v31 = vmul.f32 %v796_v18, %v796_v18  ;;  %908 = vmatpush3.bf16.msra.mxu0 %v907_v24  ;;  %v531_v17 = vld [vmem:[%s1157_s4] sm:$0xff]  ;;  %v532_v18 = vld [vmem:[%s1157_s4 + $0x8] sm:$0xff] }
  0x16   : > { %v338_v33 = vmul.f32 %v797_v19, %v797_v19  ;;  %v317_v35 = vsel %vm309_vm2, %v800_v20, 0.0  ;;  %v339_v38 = vmul.f32 %v800_v20, %v800_v20  ;;  %v319_v42 = vsel %vm309_vm2, %v801_v25, 0.0  ;;  %920 = vmatpush3.bf16.msra.mxu1 %v907_v24  ;;  %921 = vmatprep.subr.bf16.mxu0 %v986_v3  ;;  %v534_v24 = vld [vmem:[%s1157_s4 + $0x18] sm:$0xff] }
  0x17   : > { %v314_v32 = vadd.f32 %v313_v23, %v312_v27  ;;  %v343_v36 = vsel %vm309_vm2, %v335_v29, 0.0  ;;  %v344_v39 = vsel %vm309_vm2, %v336_v30, 0.0  ;;  %v346_v40 = vsel %vm309_vm2, %v337_v31, 0.0  ;;  %927 = vmatprep.subr.bf16.mxu1 %v986_v3  ;;  %v533_v23 = vld [vmem:[%s1157_s4 + $0x10] sm:$0xff] }
  0x18   : > { %v345_v43 = vadd.f32 %v344_v39, %v343_v36  ;;  %v340_v45 = vmul.f32 %v801_v25, %v801_v25  ;;  %v348_v46 = vsel %vm309_vm2, %v338_v33, 0.0  ;;  %v321_v47 = vsel %vm309_vm2, %v804_v34, 0.0 }
  0x19   : > { %v316_v37 = vadd.f32 %v315_v28, %v314_v32  ;;  %v341_v50 = vmul.f32 %v804_v34, %v804_v34  ;;  %v350_v51 = vsel %vm309_vm2, %v339_v38, 0.0  ;;  %v323_v52 = vsel %vm309_vm2, %v805_v41, 0.0  ;;  %v609_v38 = vld [vmem:[%s1154_s1] sm:$0x1] }
  0x1a   : > { %v347_v48 = vadd.f32 %v346_v40, %v345_v43  ;;  %v342_v55 = vmul.f32 %v805_v41, %v805_v41  ;;  %v352_v56 = vsel %vm309_vm2, %v340_v45, 0.0  ;;  %v922_v20 = vpack.c.bf16 %v532_v18, %v531_v17  ;;  %v686_v41 = vld [vmem:[%s1155_s2] sm:$0x1] }
  0x1b   : > { %v318_v44 = vadd.f32 %v317_v35, %v316_v37  ;;  %v354_v59 = vsel %vm309_vm2, %v341_v50, 0.0  ;;  %v925_v25 = vpack.c.bf16 %v534_v24, %v533_v23 }
  0x1c   : > { %v349_v53 = vadd.f32 %v348_v46, %v347_v48  ;;  %v356_v62 = vsel %vm309_vm2, %v342_v55, 0.0 }
  0x1d   : > { %v320_v49 = vadd.f32 %v319_v42, %v318_v44 }
  0x1e   : > { %v351_v57 = vadd.f32 %v350_v51, %v349_v53 }
  0x1f   : > { %v322_v54 = vadd.f32 %v321_v47, %v320_v49 }
  0x20   : > { %v353_v60 = vadd.f32 %v352_v56, %v351_v57 }
  0x21   : > { %v324_v58 = vadd.f32 %v323_v52, %v322_v54 }
  0x22   : > { %v355_v63 = vadd.f32 %v354_v59, %v353_v60 }
  0x23   : > { %v325_v61 = vrot.slane %v324_v58, 4 }
  0x24   : > { %v357_v1 = vadd.f32 %v356_v62, %v355_v63 }
  0x25   : > { %v326_v0 = vadd.f32 %v325_v61, %v324_v58 }
  0x26   : > { %v358_v4 = vrot.slane %v357_v1, 4 }
  0x27   : > { %v327_v2 = vrot.slane %v326_v0, 2 }
  0x28   : > { %v359_v7 = vadd.f32 %v358_v4, %v357_v1 }
  0x29   : > { %v328_v5 = vadd.f32 %v327_v2, %v326_v0 }
  0x2a   : > { %v360_v10 = vrot.slane %v359_v7, 2 }
  0x2b   : > { %v329_v8 = vrot.slane %v328_v5, 1 }
  0x2c   : > { %v361_v12 = vadd.f32 %v360_v10, %v359_v7 }
  0x2d   : > { %v330_v11 = vadd.f32 %v329_v8, %v328_v5 }
  0x2e   : > { %v362_v14 = vrot.slane %v361_v12, 1 }
  0x2f   : > { %v331_v13 = vadd.f32 %v330_v11, %v308_v9 }
  0x30   : > { %v363_v16 = vadd.f32 %v362_v14, %v361_v12 }
  0x31   : > { %333 = vst.msk [vmem:[#allocation2] sm:$0x1] %vm289_vm0, %v331_v13 }
  0x32   : > { %v364_v19 = vadd.f32 %v363_v16, %v334_v15 }
  0x34   : > { %365 = vst.msk [vmem:[#allocation3] sm:$0x1] %vm289_vm0, %v364_v19 }
  0x38   : > { %v369_v21 = vld [vmem:[#allocation2] sm:$0x1] }
  0x39   : > { %854 = vmatmul.mubr.msk.f32.vlgmr.msra.gmra.mrb[0].mxu0 %vm309_vm2, %v369_v21 }
  0x3a   : > { %923 = vmatpush3.bf16.msra.mxu0 %v922_v20  ;;  %883 = vmatprep.mubr.msk.f32.mxu0 %vm988_vm1, %v987_v6 }
  0x3b   : > { %924 = vmatprep.subr.bf16.mxu0 %v986_v3  ;;  %v453_v22 = vld [vmem:[#allocation3] sm:$0x1] }
  0x3c   : > { %873 = vmatmul.mubr.msk.f32.vlgmr.msra.gmra.mrb[0].mxu1 %vm309_vm2, %v453_v22 }
  0x3d   : > { %929 = vmatpush3.bf16.msra.mxu1 %v922_v20  ;;  %894 = vmatprep.mubr.msk.f32.mxu1 %vm988_vm1, %v987_v6 }
  0x3e   : > { %930 = vmatprep.subr.bf16.mxu1 %v986_v3  ;;  %926 = vmatpush3.bf16.msra.mxu0 %v925_v25 }
  0x41   : > { %932 = vmatpush3.bf16.msra.mxu1 %v925_v25 }
 0x10c   : > { %v447_v26 = vpop.f32.mrb[0].mxu0 }
 0x10d   : > { %v452_v27 = vmul.f32 0.0078125, %v447_v26  ;;  %v855_v28 = vpop.f32.mrb[1].mxu0 }
 0x10f   : > { %884 = vmatmul.mubr.msk.f32.vlgmr.msra.gmra.mrb[2].mxu0 %vm535_vm3, %v452_v27  ;;  %v528_v6 = vmul.f32 %v452_v27, %v452_v27  ;;  %v523_v29 = vpop.f32.mrb[0].mxu1 }
 0x110   : > { %v527_v3 = vmul.f32 0.0078125, %v523_v29  ;;  %v874_v30 = vpop.f32.mrb[1].mxu1 }
 0x112   : > { %v529_v31 = vsub.f32 %v527_v3, %v528_v6 }
 0x114   : > { %v530_v32 = vmax.f32 %v529_v31, 0.0 }
 0x116   : > { %895 = vmatmul.mubr.msk.f32.vlgmr.msra.gmra.mrb[2].mxu1 %vm535_vm3, %v530_v32 }
 0x1e2   : > { %v605_v33 = vpop.f32.mrb[2].mxu0 }
 0x1e3   : > { %v885_v34 = vpop.f32.mrb[3].mxu0 }
 0x1e9   : > { %v679_v35 = vpop.f32.mrb[2].mxu1 }
 0x1ea   : > { %v680_v36 = vadd.f32 1e-06, %v679_v35  ;;  %v896_v37 = vpop.f32.mrb[3].mxu1 }
 0x1ec   : > { %960 = vrsqrt.f32 %v680_v36 }
 0x1f6   : > { %v961_v39 = vpop.eup %960 }
 0x1f7   : > { %v684_v40 = vmul.f32 %v961_v39, %v609_v38 }
 0x1f9   : > { %685 = vst.msk [vmem:[%s281_s13] sm:$0x1] %vm289_vm0, %v684_v40  ;;  %v687_v42 = vmul.f32 %v684_v40, %v605_v33 }
 0x1fb   : > { %v688_v43 = vsub.f32 %v686_v41, %v687_v42 }
 0x1fd   : > { %689 = vst.msk [vmem:[%s284_s18] sm:$0x1] %vm289_vm0, %v688_v43 }
 0x1fe PF: > { %s17_s23 = sadd.s32 1, %s984_s23   ;;  %s1160_s21 = smov %s980_s22 }
 0x1ff   : > { %p14_p5 = scmp.ge.s32.totalorder %s17_s23, 4   ;;  %s1161_s22 = smov %s1163_s24 }
 0x201   :  { %16 = sbr.rel (!%p14_p5) target bundleno = 2 (0x2), region = 90 }

// kernel: nonlocal_block.5
= control target key start
LH: loop header
LB: loop body
LE: loop exit
PB: predicated region body
PF: predicated region fallthrough
CT: control target
= control target key end

     0   :  { %12 = vsyncpa [#allocation7], 0  ;;  %s2225_s0 = inlined_call_operand.vmem [shape: f32[2,1,64], index: 0, kind: input, shape index: {}]   ;;  %s2226_s1 = inlined_call_operand.vmem [shape: f32[2,1,64], index: 1, kind: input, shape index: {}]   ;;  %s2227_s2 = inlined_call_operand.vmem [shape: bf16[2,64,64], index: 2, kind: input, shape index: {}]   ;;  %s2228_s3 = inlined_call_operand.vmem [shape: bf16[2,64,64], index: 3, kind: input, shape index: {}]   ;;  %s2229_s4 = inlined_call_operand.vmem [shape: bf16[2,64,64], index: 4, kind: input, shape index: {}]   ;;  %s2230_s5 = inlined_call_operand.vmem [shape: bf16[64,64], index: 5, kind: input, shape index: {}]   ;;  %s2231_s6 = inlined_call_operand.vmem [shape: f32[1,64], index: 6, kind: input, shape index: {}]   ;;  %s2232_s7 = inlined_call_operand.hbm [shape: f32[2,64,64], index: 7, kind: output, shape index: {}]  }
   0x1   :  { %14 = vsyncpa [#allocation7 + $0x1], 0  ;;  %s1785_s24 = smov 0   ;;  %s1787_s25 = smov 0  }
   0x2   :  { %s1789_s26 = smov 0   ;;  %s1791_s27 = smov 0  }
   0x3   :  { %s1793_s28 = smov 0   ;;  %s1795_s29 = smov 0  }
   0x4 LB: > { %s1383_s30 = sadd.s32 4294967295, %s1737_s29   ;;  %s1384_s8 = sadd.s32 4294967294, %s1737_s29   ;;  %s1737_s29 = sphi %s1795_s29, %s20_s29   ;;  %s1733_s28 = sphi %s1793_s28, %s2242_s28   ;;  %s1729_s27 = sphi %s1791_s27, %s2241_s27   ;;  %s1725_s26 = sphi %s1789_s26, %s2240_s26   ;;  %s1721_s25 = sphi %s1787_s25, %s2239_s25   ;;  %s1717_s24 = sphi %s1785_s24, %s2238_s24  }
   0x5   : > { %s39_s9 = sadd.s32 1, %s1733_s28  ;;  %s226_s10 = sadd.s32 1, %s1725_s26 }
   0x6   : > { %p41_p0 = scmp.ge.s32.totalorder %s39_s9, 2  ;;  %p236_p1 = scmp.ne.s32.totalorder %s1725_s26, %s1721_s25 }
   0x7   : > { %p237_p2 = scmp.eq.s32.totalorder %s1383_s30, 1  ;;  %p242_p3 = scmp.ne.s32.totalorder %s1721_s25, %s1717_s24 }
   0x8   : > { %s2244_s9 = smov (%p41_p0, %s39_s9), 0  ;;  %p243_p5 = scmp.eq.s32.totalorder %s1384_s8, 1 }
   0x9   : > { %2234 = sst [smem:[#allocation9_spill]] %s2244_s9  ;;  %p1825_p4 = por %p237_p2, %p236_p1 }
   0xa   : > { %s221_s12 = ssub.s32 %s1733_s28, %s2244_s9  ;;  %p1387_p6 = scmp.ge.s32.totalorder %s1737_s29, 1 }
   0xb   : > { %p224_p7 = scmp.eq.s32.totalorder %s221_s12, 0  ;;  %p1832_p8 = por %p243_p5, %p242_p3 }
   0xc   : > { %p318_p9 = scmp.lt.s32.totalorder %s1737_s29, 3 }
   0xd   : > { %s1838_s14 = scalar_select %p224_p7, %s1725_s26, %s226_s10  }
   0xe   : > { %p319_p10 = pnand %p1387_p6, %p318_p9 }
   0xf   : > { %v1607_v0 = vld [vmem:[%s2230_s5] sm:$0xff] (!%p319_p10)   ;;  %p378_p11 = scmp.lt.s32.totalorder (!%p319_p10), %s1729_s27, 1  ;;  %v1608_v1 = vld [vmem:[%s2230_s5 + $0x8] sm:$0xff] (!%p319_p10)   ;;  %v1609_v2 = vld [vmem:[%s2230_s5 + $0x10] sm:$0xff] (!%p319_p10)   ;;  %vm509_vm0 = vcmask (!%p319_p10), 523264   ;;  %vm595_vm1 = vcmask (!%p319_p10), 7168  }
  0x10   : > { %322 = sbr.rel (%p319_p10) target bundleno = 1108 (0x454), region = 48  ;;  %1493 = vmatprep.subr.bf16.mxu0 (!%p319_p10), %v1607_v0  ;;  %v1610_v3 = vld [vmem:[%s2230_s5 + $0x18] sm:$0xff] (!%p319_p10)   ;;  %v1397_v47 = vld [vmem:[%s2231_s6] ss:$0 sm:$0xff] (!%p319_p10)  ;;  %s1430_s17 = sshll.u32 (!%p319_p10), %s1729_s27, 10 }
  0x11   : > { %1494 = vmatpush3.bf16.msra.mxu0 (!%p319_p10), %v1607_v0  ;;  %s2167_s22 = scalar_lea.hbm (!%p319_p10), %s2232_s7, %s1430_s17  ;;  %s1742_s9 = smov (!%p319_p10), [#allocation6]  }
  0x12   : > { %1495 = vmatprep.subr.bf16.mxu0 (!%p319_p10), %v1608_v1 }
  0x15   : > { %1496 = vmatpush3.bf16.msra.mxu0 (!%p319_p10), %v1608_v1 }
  0x16   : > { %1497 = vmatprep.subr.bf16.mxu0 (!%p319_p10), %v1609_v2 }
  0x17   : > { %s379_s19 = scalar_select %p378_p11, %s1729_s27, 1 }
  0x19   : > { %s380_s30 = scalar_lea.vmem %s2225_s0, %s379_s19  ;;  %s383_s12 = scalar_lea.vmem %s2226_s1, %s379_s19  ;;  %1498 = vmatpush3.bf16.msra.mxu0 %v1609_v2 }
  0x1a   : > { %s1857_s15 = sshll.u32 %s379_s19, 5  ;;  %v1395_v4 = vld [vmem:[%s380_s30] ss:$0 sm:$0xff]  ;;  %1499 = vmatprep.subr.bf16.mxu0 %v1610_v3  ;;  %s1663_s19 = sshll.u32 %s1742_s9, 4  ;;  %s1664_s19 = int_to_ptr.vmem [resolvable:$false] %s1663_s19 }
  0x1b   : > { %s392_s20 = scalar_lea.vmem %s2227_s2, %s1857_s15  ;;  %s1870_s23 = scalar_lea.vmem %s2228_s3, %s1857_s15  ;;  %v1396_v6 = vld [vmem:[%s383_s12] ss:$0 sm:$0xff] }
  0x1c   : > { %v1872_v5 = vld [vmem:[%s392_s20] sm:$0xff]   ;;  %v1874_v7 = vld [vmem:[%s392_s20 + $0x8] sm:$0xff]   ;;  %v1876_v8 = vld [vmem:[%s392_s20 + $0x10] sm:$0xff]   ;;  %s412_s10 = scalar_lea.vmem %s2229_s4, %s1857_s15  ;;  %s375_s12 = sand.u32 1, %s1721_s25  }
  0x1d   : > { %v1433_v9 = vunpack.c.l.bf16 %v1872_v5  ;;  %v1434_v10 = vunpack.c.h.bf16 %v1872_v5  ;;  %v1437_v11 = vunpack.c.l.bf16 %v1874_v7  ;;  %v1438_v12 = vunpack.c.h.bf16 %v1874_v7  ;;  %v1882_v13 = vld [vmem:[%s392_s20 + $0x18] sm:$0xff]   ;;  %v1611_v18 = vld [vmem:[%s1870_s23] sm:$0xff]   ;;  %v1612_v29 = vld [vmem:[%s1870_s23 + $0x8] sm:$0xff]   ;;  %1500 = vmatpush3.bf16.msra.mxu0 %v1610_v3  ;;  %s1388_s15 = sshll.u32 %s375_s12, 6  ;;  %s2179_s27 = scalar_lea.sflag [#allocation7], %s375_s12 }
  0x1e   : > { %v1441_v14 = vunpack.c.l.bf16 %v1876_v8  ;;  %v1442_v15 = vunpack.c.h.bf16 %v1876_v8  ;;  %v1445_v16 = vunpack.c.l.bf16 %v1882_v13  ;;  %v1446_v17 = vunpack.c.h.bf16 %v1882_v13  ;;  %1541 = vmatprep.subr.msk.bf16.mxu1 %vm509_vm0, %v1611_v18  ;;  %v1613_v42 = vld [vmem:[%s1870_s23 + $0x10] sm:$0xff]   ;;  %v1614_v44 = vld [vmem:[%s1870_s23 + $0x18] sm:$0xff]   ;;  %s2138_s16 = scalar_lea.vmem [#allocation6], %s1388_s15  ;;  %s1665_s30 = scalar_lea.vmem %s1664_s19, 2048 }
  0x1f   : > { %v443_v19 = vmul.f32 %v1433_v9, %v1395_v4  ;;  %v444_v20 = vmul.f32 %v1434_v10, %v1395_v4  ;;  %v445_v21 = vmul.f32 %v1437_v11, %v1395_v4  ;;  %v446_v22 = vmul.f32 %v1438_v12, %v1395_v4  ;;  %s1247_s18 = sshll.u32 %s2138_s16, 4  ;;  %s2169_s18 = int_to_ptr.vmem [resolvable:$true] %s1247_s18 }
  0x20   : > { %v447_v23 = vmul.f32 %v1441_v14, %v1395_v4  ;;  %v448_v24 = vmul.f32 %v1442_v15, %v1395_v4  ;;  %v449_v32 = vmul.f32 %v1445_v16, %v1395_v4  ;;  %v450_v35 = vmul.f32 %v1446_v17, %v1395_v4  ;;  %s1659_s23 = scalar_lea.vmem %s2169_s18, 1024  ;;  %p1666_p1 = scmp.lt.s32.totalorder %s2169_s18, %s1664_s19 }
  0x21   : > { %v458_v25 = vadd.f32 %v1396_v6, %v443_v19  ;;  %v459_v26 = vadd.f32 %v1396_v6, %v444_v20  ;;  %v460_v27 = vadd.f32 %v1396_v6, %v445_v21  ;;  %v461_v28 = vadd.f32 %v1396_v6, %v446_v22  ;;  %p1660_p12 = scmp.ne.s32.totalorder %s2169_s18, %s1659_s23  ;;  %p1667_p2 = scmp.lt.s32.totalorder %s1665_s30, %s1659_s23 }
  0x22   : > { %v462_v30 = vadd.f32 %v1396_v6, %v447_v23  ;;  %v463_v31 = vadd.f32 %v1396_v6, %v448_v24  ;;  %v666_v36 = vsel %vm509_vm0, %v1611_v18, 0  ;;  %v464_v38 = vadd.f32 %v1396_v6, %v449_v32 }
  0x23   : > { %v466_v33 = vpack.c.bf16 %v459_v26, %v458_v25  ;;  %v467_v34 = vpack.c.bf16 %v461_v28, %v460_v27  ;;  %1510 = vmatpush3.bf16.xpose.msra.mxu1 %v666_v36  ;;  %v465_v39 = vadd.f32 %v1396_v6, %v450_v35  ;;  %v669_v40 = vsel %vm509_vm0, %v1612_v29, 0  ;;  %p1661_p13 = pnand %p1660_p12, %p1825_p4  ;;  %p1668_p3 = por %p1667_p2, %p1666_p1 }
  0x24   : > { %v468_v37 = vpack.c.bf16 %v463_v31, %v462_v30  ;;  %1542 = vmatprep.subr.msk.bf16.mxu1 %vm509_vm0, %v1612_v29  ;;  %v672_v43 = vsel %vm509_vm0, %v1613_v42, 0  ;;  %v675_v45 = vsel %vm509_vm0, %v1614_v44, 0  ;;  %v1739_v19 = vmov -inf  }
  0x25   : > { %1501 = vmatprep.mubr.msk.bf16.mxu0 %vm509_vm0, %v466_v33  ;;  %v469_v41 = vpack.c.bf16 %v465_v39, %v464_v38  ;;  %598 = vst.msk [vmem:[#allocation3 + $0x10] sm:$0xff] %vm595_vm1, %v1739_v19  ;;  %596 = vst.msk [vmem:[#allocation3] sm:$0xff] %vm595_vm1, %v1739_v19  ;;  %v1740_v36 = vmov 0   ;;  %p1662_p0 = pneg %p1661_p13 }
  0x26   : > { %1502 = vmatmul.mubr.msk.bf16.vlgmr.msra.gmra.mrb[0].mxu0 %vm509_vm0, %v467_v34  ;;  %597 = vst.msk [vmem:[#allocation3 + $0x8] sm:$0xff] %vm595_vm1, %v1739_v19  ;;  %599 = vst.msk [vmem:[#allocation3 + $0x18] sm:$0xff] %vm595_vm1, %v1739_v19  ;;  %1605 = vset.pattern.permute.xlu0 %v1740_v36 }
  0x27   : > { %1505 = vmatprep.mubr.msk.bf16.mxu0 %vm509_vm0, %v468_v37  ;;  %600 = vst.msk [vmem:[#allocation3 + $0x20] sm:$0xff] %vm595_vm1, %v1739_v19  ;;  %601 = vst.msk [vmem:[#allocation3 + $0x28] sm:$0xff] %vm595_vm1, %v1739_v19  ;;  %1606 = vset.pattern.permute.xlu1 %v1740_v36  ;;  %v1741_v37 = vmov 0.0   ;;  %p1669_p5 = pnand %p1668_p3, %p1662_p0 }
  0x28   : > { %602 = vst.msk [vmem:[#allocation3 + $0x30] sm:$0xff] %vm595_vm1, %v1739_v19  ;;  %603 = vst.msk [vmem:[#allocation3 + $0x38] sm:$0xff] %vm595_vm1, %v1739_v19 }
  0x29   : > { %606 = vst.msk [vmem:[#allocation4 + $0x10] sm:$0xff] %vm595_vm1, %v1741_v37  ;;  %604 = vst.msk [vmem:[#allocation4] sm:$0xff] %vm595_vm1, %v1741_v37 }
  0x2a   : > { %605 = vst.msk [vmem:[#allocation4 + $0x8] sm:$0xff] %vm595_vm1, %v1741_v37  ;;  %607 = vst.msk [vmem:[#allocation4 + $0x18] sm:$0xff] %vm595_vm1, %v1741_v37 }
  0x2b   : > { %1512 = vmatpush3.bf16.xpose.msra.mxu1 %v669_v40  ;;  %608 = vst.msk [vmem:[#allocation4 + $0x20] sm:$0xff] %vm595_vm1, %v1741_v37  ;;  %609 = vst.msk [vmem:[#allocation4 + $0x28] sm:$0xff] %vm595_vm1, %v1741_v37 }
  0x2c   : > { %1543 = vmatprep.subr.msk.bf16.mxu1 %vm509_vm0, %v1613_v42  ;;  %610 = vst.msk [vmem:[#allocation4 + $0x30] sm:$0xff] %vm595_vm1, %v1741_v37  ;;  %611 = vst.msk [vmem:[#allocation4 + $0x38] sm:$0xff] %vm595_vm1, %v1741_v37  ;;  %v1987_v38 = vld [vmem:[#allocation3 + $0x10] sm:$0xff]  ;;  %v1989_v39 = vld [vmem:[#allocation3] sm:$0xff] }
  0x2d   : > { %612 = vst.msk [vmem:[#allocation5] sm:$0xff] %vm509_vm0, %v1741_v37  ;;  %613 = vst.msk [vmem:[#allocation5 + $0x8] sm:$0xff] %vm509_vm0, %v1741_v37 }
  0x2e   : > { %1506 = vmatmul.mubr.msk.bf16.gmra.mrb[4].mxu0 %vm509_vm0, %v469_v41  ;;  %614 = vst.msk [vmem:[#allocation5 + $0x10] sm:$0xff] %vm509_vm0, %v1741_v37  ;;  %615 = vst.msk [vmem:[#allocation5 + $0x18] sm:$0xff] %vm509_vm0, %v1741_v37 }
  0x2f   : > { %616 = vst.msk [vmem:[#allocation5 + $0x20] sm:$0xff] %vm509_vm0, %v1741_v37  ;;  %617 = vst.msk [vmem:[#allocation5 + $0x28] sm:$0xff] %vm509_vm0, %v1741_v37 }
  0x30   : > { %618 = vst.msk [vmem:[#allocation5 + $0x30] sm:$0xff] %vm509_vm0, %v1741_v37  ;;  %619 = vst.msk [vmem:[#allocation5 + $0x38] sm:$0xff] %vm509_vm0, %v1741_v37 }
  0x33   : > { %1514 = vmatpush3.bf16.xpose.msra.mxu1 %v672_v43 }
  0x34   : > { %1544 = vmatprep.subr.msk.bf16.mxu1 %vm509_vm0, %v1614_v44  ;;  %v1997_v44 = vld [vmem:[#allocation3 + $0x18] sm:$0xff] }
  0x3b   : > { %1516 = vmatpush3.bf16.xpose.msra.mxu1 %v675_v45 }
  0xf9   : > { %v1503_v46 = vpop.f32.mrb[0].mxu0 }
  0xfa   : > { %v556_v48 = vpop.f32.mrb[1].mxu0  ;;  %v565_v50 = vadd.f32 %v1503_v46, %v1397_v47  ;;  %v2004_v46 = vld [vmem:[#allocation3 + $0x8] sm:$0xff] }
  0xfb   : > { %v1504_v49 = vpop.f32.mrb[2].mxu0  ;;  %v557_v53 = vadd.f32 %v1397_v47, %v556_v48 }
  0xfc   : > { %v568_v51 = vadd.f32 %v1504_v49, %v1397_v47  ;;  %v559_v52 = vpop.f32.mrb[3].mxu0 }
  0xfd   : > { %v560_v54 = vadd.f32 %v1397_v47, %v559_v52 }
  0xfe   : > { %v588_v55 = vpack.c.bf16 %v568_v51, %v565_v50 }
  0xff   : > { %v587_v56 = vpack.c.bf16 %v560_v54, %v557_v53  ;;  %v2022_v53 = vld [vmem:[#allocation3 + $0x20] sm:$0xff] }
 0x100   : > { %592 = vst.msk [vmem:[#allocation2 + $0x8] sm:$0xff] %vm509_vm0, %v588_v55 }
 0x101   : > { %591 = vst.msk [vmem:[#allocation2] sm:$0xff] %vm509_vm0, %v587_v56  ;;  %v1507_v57 = vpop.f32.mrb[4].mxu0  ;;  %v2028_v56 = vld [vmem:[#allocation3 + $0x28] sm:$0xff] }
 0x102   : > { %v572_v58 = vpop.f32.mrb[5].mxu0  ;;  %v581_v60 = vadd.f32 %v1507_v57, %v1397_v47 }
 0x103   : > { %v1508_v59 = vpop.f32.mrb[6].mxu0  ;;  %v573_v63 = vadd.f32 %v1397_v47, %v572_v58 }
 0x104   : > { %v584_v61 = vadd.f32 %v1508_v59, %v1397_v47  ;;  %v575_v62 = vpop.f32.mrb[7].mxu0  ;;  %v2034_v59 = vld [vmem:[#allocation3 + $0x30] sm:$0xff] }
 0x105   : > { %v576_v0 = vadd.f32 %v1397_v47, %v575_v62 }
 0x106   : > { %v590_v1 = vpack.c.bf16 %v584_v61, %v581_v60  ;;  %v2036_v60 = vld [vmem:[#allocation3 + $0x38] sm:$0xff] }
 0x107   : > { %v589_v2 = vpack.c.bf16 %v576_v0, %v573_v63  ;;  %v621_v4 = vld [vmem:[#allocation2 + $0x8] sm:$0xff]  ;;  %v1615_v63 = vld [vmem:[%s412_s10] sm:$0xff]  }
 0x108   : > { %594 = vst.msk [vmem:[#allocation2 + $0x18] sm:$0xff] %vm509_vm0, %v590_v1  ;;  %v620_v3 = vld [vmem:[#allocation2] sm:$0xff]  ;;  %1525 = vmatprep.subr.bf16.mxu0 %v1615_v63 }
 0x109   : > { %593 = vst.msk [vmem:[#allocation2 + $0x10] sm:$0xff] %vm509_vm0, %v589_v2  ;;  %1517 = vmatprep.mubr.msk.bf16.mxu1 %vm509_vm0, %v620_v3  ;;  %1526 = vmatpush3.bf16.msra.mxu0 %v1615_v63 }
 0x10a   : > { %1518 = vmatmul.mubr.msk.bf16.vlgmr.msra.gmra.mrb[0].mxu1 %vm509_vm0, %v621_v4 }
 0x10f   : > { %v623_v18 = vld [vmem:[#allocation2 + $0x18] sm:$0xff] }
 0x110   : > { %v622_v6 = vld [vmem:[#allocation2 + $0x10] sm:$0xff] }
 0x111   : > { %1521 = vmatprep.mubr.msk.bf16.mxu1 %vm509_vm0, %v622_v6 }
 0x112   : > { %1522 = vmatmul.mubr.msk.bf16.gmra.mrb[4].mxu1 %vm509_vm0, %v623_v18  ;;  %v1616_v18 = vld [vmem:[%s412_s10 + $0x8] sm:$0xff]  }
 0x113   : > { %1527 = vmatprep.subr.bf16.mxu0 %v1616_v18 }
 0x114   : > { %1528 = vmatpush3.bf16.msra.mxu0 %v1616_v18 }
 0x1dd   : > { %v1939_v20 = vpop.f32.mrb[0].mxu1 }
 0x1de   : > { %v1941_v21 = vpop.f32.mrb[1].mxu1  ;;  %v756_v22 = vsel %vm509_vm0, %v1939_v20, -inf }
 0x1df   : > { %757 = vmax.xlane.f32.xlu1 %v756_v22  ;;  %v1945_v23 = vpop.f32.mrb[2].mxu1  ;;  %v750_v24 = vsel %vm509_vm0, %v1941_v21, -inf  ;;  %v1617_v22 = vld [vmem:[%s412_s10 + $0x10] sm:$0xff]  }
 0x1e0   : > { %751 = vmax.xlane.f32.xlu0 %v750_v24  ;;  %v1949_v25 = vpop.f32.mrb[3].mxu1  ;;  %v759_v26 = vsel %vm509_vm0, %v1945_v23, -inf  ;;  %1529 = vmatprep.subr.bf16.mxu0 %v1617_v22  ;;  %v1618_v24 = vld [vmem:[%s412_s10 + $0x18] sm:$0xff]  }
 0x1e1   : > { %v753_v27 = vsel %vm509_vm0, %v1949_v25, -inf  ;;  %1530 = vmatpush3.bf16.msra.mxu0 %v1617_v22 }
 0x1e2   : > { %1531 = vmatprep.subr.bf16.mxu0 %v1618_v24 }
 0x1e3   : > { %760 = vmax.xlane.f32.xlu1 %v759_v26 }
 0x1e4   : > { %754 = vmax.xlane.f32.xlu0 %v753_v27 }
 0x1e5   : > { %v1955_v28 = vpop.f32.mrb[4].mxu1  ;;  %1532 = vmatpush3.bf16.msra.mxu0 %v1618_v24 }
 0x1e6   : > { %v1957_v29 = vpop.f32.mrb[5].mxu1  ;;  %v768_v34 = vsel %vm509_vm0, %v1955_v28, -inf }
 0x1e7   : > { %v1959_v30 = vpop.f32.mrb[6].mxu1  ;;  %v762_v31 = vsel %vm509_vm0, %v1957_v29, -inf }
 0x1e8   : > { %763 = vmax.xlane.f32.xlu0 %v762_v31  ;;  %v1963_v32 = vpop.f32.mrb[7].mxu1  ;;  %v771_v35 = vsel %vm509_vm0, %v1959_v30, -inf }
 0x1e9   : > { %v765_v33 = vsel %vm509_vm0, %v1963_v32, -inf }
 0x1ea   : > { %766 = vmax.xlane.f32.xlu1 %v765_v33 }
 0x1ec   : > { %769 = vmax.xlane.f32.xlu0 %v768_v34 }
 0x1ee   : > { %772 = vmax.xlane.f32.xlu1 %v771_v35 }
 0x26c   : > { %v758_v40 = vpop.xlane.xlu1 %757 }
 0x26d   : > { %v1992_v41 = vmax.f32 %v1987_v38, %v758_v40  ;;  %v752_v42 = vpop.xlane.xlu0 %751 }
 0x26e   : > { %v1995_v43 = vmax.f32 %v1989_v39, %v752_v42 }
 0x26f   : > { %v784_v45 = vsub.f32 %v1987_v38, %v1992_v41  ;;  %1118 = vst.msk [vmem:[#allocation3 + $0x10] sm:$0xff] %vm595_vm1, %v1992_v41  ;;  %818 = vperm.xlu1 %1606, %v1992_v41  }
 0x270   : > { %v782_v47 = vsub.f32 %v1989_v39, %v1995_v43  ;;  %1116 = vst.msk [vmem:[#allocation3] sm:$0xff] %vm595_vm1, %v1995_v43  ;;  %v761_v48 = vpop.xlane.xlu1 %760  ;;  %808 = vperm.xlu0 %1605, %v1995_v43  }
 0x271   : > { %v2012_v49 = vmax.f32 %v1997_v44, %v761_v48  ;;  %v755_v50 = vpop.xlane.xlu0 %754 }
 0x272   : > { %v2015_v51 = vmax.f32 %v2004_v46, %v755_v50 }
 0x273   : > { %v785_v52 = vsub.f32 %v1997_v44, %v2012_v49  ;;  %1119 = vst.msk [vmem:[#allocation3 + $0x18] sm:$0xff] %vm595_vm1, %v2012_v49  ;;  %823 = vperm.xlu1 %1606, %v2012_v49  }
 0x274   : > { %v783_v54 = vsub.f32 %v2004_v46, %v2015_v51  ;;  %1117 = vst.msk [vmem:[#allocation3 + $0x8] sm:$0xff] %vm595_vm1, %v2015_v51 }
 0x275   : > { %v764_v55 = vpop.xlane.xlu0 %763  ;;  %v796_v46 = vmul.f32 1.442695, %v785_v52 }
 0x276   : > { %v2031_v57 = vmax.f32 %v2022_v53, %v764_v55 }
 0x277   : > { %813 = vperm.xlu1 %1606, %v2015_v51   ;;  %v767_v58 = vpop.xlane.xlu1 %766 }
 0x278   : > { %v786_v61 = vsub.f32 %v2022_v53, %v2031_v57  ;;  %1120 = vst.msk [vmem:[#allocation3 + $0x20] sm:$0xff] %vm595_vm1, %v2031_v57  ;;  %v2047_v62 = vmax.f32 %v2028_v56, %v767_v58 }
 0x279   : > { %v770_v0 = vpop.xlane.xlu0 %769 }
 0x27a   : > { %v787_v1 = vsub.f32 %v2028_v56, %v2047_v62  ;;  %1121 = vst.msk [vmem:[#allocation3 + $0x28] sm:$0xff] %vm595_vm1, %v2047_v62  ;;  %v2054_v2 = vmax.f32 %v2034_v59, %v770_v0  ;;  %v873_v56 = vld [vmem:[#allocation4 + $0x18] sm:$0xff] }
 0x27b   : > { %v773_v3 = vpop.xlane.xlu1 %772 }
 0x27c   : > { %v788_v4 = vsub.f32 %v2034_v59, %v2054_v2  ;;  %1122 = vst.msk [vmem:[#allocation3 + $0x30] sm:$0xff] %vm595_vm1, %v2054_v2  ;;  %v2061_v6 = vmax.f32 %v2036_v60, %v773_v3  ;;  %838 = vperm.xlu1 %1606, %v2054_v2   ;;  %v800_v39 = vmul.f32 1.442695, %v787_v1  ;;  %v870_v1 = vld [vmem:[#allocation4] sm:$0xff] }
 0x27e   : > { %v789_v19 = vsub.f32 %v2036_v60, %v2061_v6  ;;  %1123 = vst.msk [vmem:[#allocation3 + $0x38] sm:$0xff] %vm595_vm1, %v2061_v6  ;;  %v802_v38 = vmul.f32 1.442695, %v788_v4 }
 0x280   : > { %828 = vperm.xlu1 %1606, %v2031_v57   ;;  %v804_v43 = vmul.f32 1.442695, %v789_v19 }
 0x284   : > { %833 = vperm.xlu1 %1606, %v2047_v62   ;;  %v871_v62 = vld [vmem:[#allocation4 + $0x8] sm:$0xff] }
 0x288   : > { %843 = vperm.xlu1 %1606, %v2061_v6  }
 0x2ee   : > { %v819_v26 = vpop.permute.xlu1 %818 }
 0x2ef   : > { %v848_v31 = vsub.f32 %v1939_v20, %v819_v26  ;;  %v809_v34 = vpop.permute.xlu0 %808 }
 0x2f0   : > { %v846_v37 = vsub.f32 %v1941_v21, %v809_v34 }
 0x2f2   : > { %v824_v27 = vpop.permute.xlu1 %823 }
 0x2f3   : > { %v849_v33 = vsub.f32 %v1945_v23, %v824_v27 }
 0x2f5   : > { %v855_v35 = vpack.c.bf16 %v849_v33, %v848_v31 }
 0x2f6   : > { %v814_v36 = vpop.permute.xlu1 %813 }
 0x2f7   : > { %v862_v40 = vmul.bf16 1069105081, %v855_v35  ;;  %v847_v42 = vsub.f32 %v1949_v25, %v814_v36 }
 0x2f9   : > { %1619 = vpow.bf16 %v862_v40  ;;  %v854_v48 = vpack.c.bf16 %v847_v42, %v846_v37 }
 0x2fb   : > { %v859_v50 = vmul.bf16 1069105081, %v854_v48  ;;  %v839_v55 = vpop.permute.xlu1 %838 }
 0x2fc   : > { %v852_v27 = vsub.f32 %v1955_v28, %v839_v55 }
 0x2fd   : > { %1621 = vpow.bf16 %v859_v50 }
 0x2ff   : > { %v829_v58 = vpop.permute.xlu1 %828 }
 0x300   : > { %v850_v20 = vsub.f32 %v1957_v29, %v829_v58 }
 0x303   : > { %v834_v63 = vpop.permute.xlu1 %833 }
 0x304   : > { %v1620_v0 = vpop.eup %1619  ;;  %v851_v23 = vsub.f32 %v1963_v32, %v834_v63 }
 0x305   : > { %v889_v3 = vunpack.c.h.bf16 %v1620_v0  ;;  %v888_v18 = vunpack.c.l.bf16 %v1620_v0 }
 0x306   : > { %v856_v22 = vpack.c.bf16 %v851_v23, %v850_v20  ;;  %v792_v20 = vmul.f32 1.442695, %v783_v54  ;;  %v794_v23 = vmul.f32 1.442695, %v784_v45  ;;  %v872_v54 = vld [vmem:[#allocation4 + $0x10] sm:$0xff] }
 0x307   : > { %v844_v24 = vpop.permute.xlu1 %843  ;;  %v903_v21 = vsel %vm509_vm0, %v889_v3, 0.0  ;;  %v900_v25 = vsel %vm509_vm0, %v888_v18, 0.0  ;;  %v790_v3 = vmul.f32 1.442695, %v782_v47  ;;  %v798_v18 = vmul.f32 1.442695, %v786_v61 }
 0x308   : > { %v1622_v26 = vpop.eup %1621  ;;  %v865_v31 = vmul.bf16 1069105081, %v856_v22  ;;  %v853_v33 = vsub.f32 %v1959_v30, %v844_v24  ;;  %904 = vadd.xlane.f32.xlu1 %v903_v21  ;;  %901 = vadd.xlane.f32.xlu0 %v900_v25 }
 0x309   : > { %1533 = vmatprep.mubr.msk.bf16.mxu0 %vm509_vm0, %v1622_v26  ;;  %v887_v29 = vunpack.c.h.bf16 %v1622_v26  ;;  %v886_v32 = vunpack.c.l.bf16 %v1622_v26 }
 0x30a   : > { %1623 = vpow.bf16 %v865_v31  ;;  %v857_v34 = vpack.c.bf16 %v853_v33, %v852_v27  ;;  %1534 = vmatmul.mubr.msk.bf16.vlgmr.msra.gmra.mrb[8].mxu0 %vm509_vm0, %v1620_v0  ;;  %v874_v31 = vld [vmem:[#allocation4 + $0x20] sm:$0xff]  ;;  %v875_v33 = vld [vmem:[#allocation4 + $0x28] sm:$0xff] }
 0x30b   : > { %v897_v35 = vsel %vm509_vm0, %v887_v29, 0.0  ;;  %v894_v36 = vsel %vm509_vm0, %v886_v32, 0.0 }
 0x30c   : > { %v868_v37 = vmul.bf16 1069105081, %v857_v34  ;;  %898 = vadd.xlane.f32.xlu0 %v897_v35  ;;  %895 = vadd.xlane.f32.xlu1 %v894_v36 }
 0x30e   : > { %1625 = vpow.bf16 %v868_v37 }
 0x30f   : > { %1627 = vpow2.f32 %v792_v20 }
 0x310   : > { %1629 = vpow2.f32 %v794_v23 }
 0x311   : > { %1631 = vpow2.f32 %v790_v3 }
 0x312   : > { %1633 = vpow2.f32 %v798_v18 }
 0x313   : > { %1635 = vpow2.f32 %v796_v46 }
 0x314   : > { %1637 = vpow2.f32 %v802_v38 }
 0x315   : > { %v1624_v28 = vpop.eup %1623  ;;  %1639 = vpow2.f32 %v800_v39 }
 0x316   : > { %1537 = vmatprep.mubr.msk.bf16.mxu0 %vm509_vm0, %v1624_v28  ;;  %v891_v30 = vunpack.c.h.bf16 %v1624_v28  ;;  %v890_v40 = vunpack.c.l.bf16 %v1624_v28  ;;  %1641 = vpow2.f32 %v804_v43  ;;  %v876_v28 = vld [vmem:[#allocation4 + $0x30] sm:$0xff] }
 0x318   : > { %v909_v42 = vsel %vm509_vm0, %v891_v30, 0.0  ;;  %v906_v48 = vsel %vm509_vm0, %v890_v40, 0.0  ;;  %v877_v30 = vld [vmem:[#allocation4 + $0x38] sm:$0xff] }
 0x319   : > { %v1626_v50 = vpop.eup %1625  ;;  %910 = vadd.xlane.f32.xlu1 %v909_v42  ;;  %907 = vadd.xlane.f32.xlu0 %v906_v48 }
 0x31a   : > { %1538 = vmatmul.mubr.msk.bf16.gmra.mrb[12].mxu0 %vm509_vm0, %v1626_v50  ;;  %v893_v55 = vunpack.c.h.bf16 %v1626_v50  ;;  %v892_v58 = vunpack.c.l.bf16 %v1626_v50  ;;  %v1628_v41 = vpop.eup %1627 }
 0x31b   : > { %v1630_v44 = vpop.eup %1629  ;;  %v879_v6 = vmul.f32 %v1628_v41, %v871_v62 }
 0x31c   : > { %v915_v63 = vsel %vm509_vm0, %v893_v55, 0.0  ;;  %v912_v0 = vsel %vm509_vm0, %v892_v58, 0.0  ;;  %v1632_v45 = vpop.eup %1631  ;;  %v880_v57 = vmul.f32 %v1630_v44, %v872_v54  ;;  %v935_v54 = vld [vmem:[#allocation5] sm:$0xff] }
 0x31d   : > { %916 = vadd.xlane.f32.xlu1 %v915_v63  ;;  %913 = vadd.xlane.f32.xlu0 %v912_v0  ;;  %v1634_v47 = vpop.eup %1633  ;;  %v878_v19 = vmul.f32 %v1632_v45, %v870_v1 }
 0x31e   : > { %v1636_v49 = vpop.eup %1635  ;;  %v882_v34 = vmul.f32 %v1634_v47, %v874_v31  ;;  %v941_v31 = vld [vmem:[#allocation5 + $0x30] sm:$0xff] }
 0x31f   : > { %v1638_v51 = vpop.eup %1637  ;;  %v881_v59 = vmul.f32 %v1636_v49, %v873_v56  ;;  %v938_v56 = vld [vmem:[#allocation5 + $0x18] sm:$0xff] }
 0x320   : > { %v1640_v52 = vpop.eup %1639  ;;  %v884_v48 = vmul.f32 %v1638_v51, %v876_v28 }
 0x321   : > { %v1642_v53 = vpop.eup %1641  ;;  %v883_v35 = vmul.f32 %v1640_v52, %v875_v33 }
 0x322   : > { %v885_v50 = vmul.f32 %v1642_v53, %v877_v30 }
 0x32e   : > { %950 = vperm.xlu1 %1606, %v1628_v41  }
 0x332   : > { %955 = vperm.xlu1 %1606, %v1630_v44  }
 0x333   : > { %945 = vperm.xlu0 %1605, %v1632_v45  }
 0x336   : > { %965 = vperm.xlu1 %1606, %v1634_v47  }
 0x337   : > { %960 = vperm.xlu0 %1605, %v1636_v49  }
 0x33a   : > { %975 = vperm.xlu1 %1606, %v1638_v51  }
 0x33b   : > { %970 = vperm.xlu0 %1605, %v1640_v52   ;;  %v937_v52 = vld [vmem:[#allocation5 + $0x10] sm:$0xff] }
 0x33f   : > { %980 = vperm.xlu0 %1605, %v1642_v53  }
 0x395   : > { %v902_v60 = vpop.xlane.xlu0 %901  ;;  %v905_v61 = vpop.xlane.xlu1 %904 }
 0x396   : > { %v920_v2 = vadd.f32 %v902_v60, %v880_v57  ;;  %v921_v4 = vadd.f32 %v905_v61, %v881_v59  ;;  %v936_v59 = vld [vmem:[#allocation5 + $0x8] sm:$0xff] }
 0x398   : > { %929 = vst.msk [vmem:[#allocation4 + $0x10] sm:$0xff] %vm595_vm1, %v920_v2  ;;  %930 = vst.msk [vmem:[#allocation4 + $0x18] sm:$0xff] %vm595_vm1, %v921_v4 }
 0x399   : > { %v899_v22 = vpop.xlane.xlu0 %898  ;;  %v896_v24 = vpop.xlane.xlu1 %895 }
 0x39a   : > { %v919_v21 = vadd.f32 %v899_v22, %v879_v6  ;;  %v918_v25 = vadd.f32 %v896_v24, %v878_v19 }
 0x39c   : > { %928 = vst.msk [vmem:[#allocation4 + $0x8] sm:$0xff] %vm595_vm1, %v919_v21  ;;  %927 = vst.msk [vmem:[#allocation4] sm:$0xff] %vm595_vm1, %v918_v25 }
 0x39f   : > { %v1129_v26 = vld [vmem:[#allocation4 + $0x10] sm:$0xff]  ;;  %v1130_v27 = vld [vmem:[#allocation4 + $0x18] sm:$0xff] }
 0x3a0   : > { %1643 = vrcp.f32 %v1129_v26 }
 0x3a1   : > { %1645 = vrcp.f32 %v1130_v27 }
 0x3a3   : > { %v1128_v29 = vld [vmem:[#allocation4 + $0x8] sm:$0xff]  ;;  %v1127_v32 = vld [vmem:[#allocation4] sm:$0xff] }
 0x3a4   : > { %1647 = vrcp.f32 %v1128_v29  ;;  %v939_v29 = vld [vmem:[#allocation5 + $0x20] sm:$0xff] }
 0x3a5   : > { %1649 = vrcp.f32 %v1127_v32  ;;  %v942_v32 = vld [vmem:[#allocation5 + $0x38] sm:$0xff] }
 0x3a6   : > { %v908_v36 = vpop.xlane.xlu0 %907  ;;  %v911_v37 = vpop.xlane.xlu1 %910 }
 0x3a7   : > { %v922_v40 = vadd.f32 %v908_v36, %v882_v34  ;;  %v923_v42 = vadd.f32 %v911_v37, %v883_v35  ;;  %v940_v35 = vld [vmem:[#allocation5 + $0x28] sm:$0xff] }
 0x3a9   : > { %931 = vst.msk [vmem:[#allocation4 + $0x20] sm:$0xff] %vm595_vm1, %v922_v40  ;;  %932 = vst.msk [vmem:[#allocation4 + $0x28] sm:$0xff] %vm595_vm1, %v923_v42 }
 0x3aa   : > { %v1644_v55 = vpop.eup %1643  ;;  %v914_v58 = vpop.xlane.xlu0 %913 }
 0x3ab   : > { %v917_v63 = vpop.xlane.xlu1 %916  ;;  %v1646_v0 = vpop.eup %1645  ;;  %v924_v20 = vadd.f32 %v914_v58, %v884_v48  ;;  %1179 = vperm.xlu1 %1606, %v1644_v55  }
 0x3ac   : > { %v925_v23 = vadd.f32 %v917_v63, %v885_v50  ;;  %1184 = vperm.xlu0 %1605, %v1646_v0  }
 0x3ad   : > { %933 = vst.msk [vmem:[#allocation4 + $0x30] sm:$0xff] %vm595_vm1, %v924_v20 }
 0x3ae   : > { %934 = vst.msk [vmem:[#allocation4 + $0x38] sm:$0xff] %vm595_vm1, %v925_v23  ;;  %v1648_v3 = vpop.eup %1647 }
 0x3af   : > { %v1650_v18 = vpop.eup %1649  ;;  %v951_v49 = vpop.permute.xlu1 %950 }
 0x3b0   : > { %1174 = vperm.xlu0 %1605, %v1648_v3   ;;  %1169 = vperm.xlu1 %1606, %v1650_v18   ;;  %v1131_v46 = vld [vmem:[#allocation4 + $0x20] sm:$0xff]  ;;  %v1132_v38 = vld [vmem:[#allocation4 + $0x28] sm:$0xff]  ;;  %v984_v6 = vmul.f32 %v951_v49, %v936_v59 }
 0x3b1   : > { %1651 = vrcp.f32 %v1131_v46 }
 0x3b2   : > { %1653 = vrcp.f32 %v1132_v38  ;;  %v946_v51 = vpop.permute.xlu0 %945 }
 0x3b3   : > { %v956_v53 = vpop.permute.xlu1 %955  ;;  %v983_v61 = vmul.f32 %v946_v51, %v935_v54 }
 0x3b4   : > { %v1133_v39 = vld [vmem:[#allocation4 + $0x30] sm:$0xff]  ;;  %v985_v60 = vmul.f32 %v956_v53, %v937_v52 }
 0x3b5   : > { %v1134_v41 = vld [vmem:[#allocation4 + $0x38] sm:$0xff]  ;;  %1655 = vrcp.f32 %v1133_v39 }
 0x3b6   : > { %1657 = vrcp.f32 %v1134_v41  ;;  %v961_v57 = vpop.permute.xlu0 %960 }
 0x3b7   : > { %v986_v1 = vmul.f32 %v961_v57, %v938_v56  ;;  %v966_v26 = vpop.permute.xlu1 %965 }
 0x3b8   : > { %v987_v37 = vmul.f32 %v966_v26, %v939_v29 }
 0x3ba   : > { %v971_v27 = vpop.permute.xlu0 %970 }
 0x3bb   : > { %v1652_v43 = vpop.eup %1651  ;;  %v976_v33 = vpop.permute.xlu1 %975  ;;  %v988_v48 = vmul.f32 %v971_v27, %v940_v35 }
 0x3bc   : > { %v1654_v44 = vpop.eup %1653  ;;  %1189 = vperm.xlu1 %1606, %v1652_v43   ;;  %v989_v36 = vmul.f32 %v976_v33, %v941_v31 }
 0x3bd   : > { %1194 = vperm.xlu0 %1605, %v1654_v44  }
 0x3be   : > { %v981_v34 = vpop.permute.xlu0 %980 }
 0x3bf   : > { %v1656_v45 = vpop.eup %1655  ;;  %v990_v30 = vmul.f32 %v981_v34, %v942_v32 }
 0x3c0   : > { %v1658_v47 = vpop.eup %1657  ;;  %1199 = vperm.xlu1 %1606, %v1656_v45  }
 0x3c1   : > { %1204 = vperm.xlu0 %1605, %v1658_v47  }
 0x3dd   : > { %v1535_v62 = vpop.f32.mrb[8].mxu0 }
 0x3de   : > { %v1102_v2 = vadd.f32 %v1535_v62, %v985_v60  ;;  %v1069_v4 = vpop.f32.mrb[9].mxu0 }
 0x3df   : > { %v1100_v19 = vadd.f32 %v1069_v4, %v983_v61  ;;  %v1536_v22 = vpop.f32.mrb[10].mxu0 }
 0x3e0   : > { %1110 = vst.msk [vmem:[#allocation5 + $0x10] sm:$0xff] %vm509_vm0, %v1102_v2  ;;  %v1103_v24 = vadd.f32 %v1536_v22, %v986_v1  ;;  %v1072_v21 = vpop.f32.mrb[11].mxu0 }
 0x3e1   : > { %1108 = vst.msk [vmem:[#allocation5] sm:$0xff] %vm509_vm0, %v1100_v19  ;;  %v1101_v25 = vadd.f32 %v1072_v21, %v984_v6 }
 0x3e2   : > { %1111 = vst.msk [vmem:[#allocation5 + $0x18] sm:$0xff] %vm509_vm0, %v1103_v24 }
 0x3e3   : > { %1109 = vst.msk [vmem:[#allocation5 + $0x8] sm:$0xff] %vm509_vm0, %v1101_v25 }
 0x3e7   : > { %v1161_v20 = vld [vmem:[#allocation5 + $0x10] sm:$0xff] }
 0x3e8   : > { %v1159_v45 = vld [vmem:[#allocation5] sm:$0xff] }
 0x3e9   : > { %v1162_v3 = vld [vmem:[#allocation5 + $0x18] sm:$0xff] }
 0x3ea   : > { %v1160_v44 = vld [vmem:[#allocation5 + $0x8] sm:$0xff] }
 0x3ed   : > { %v1539_v28 = vpop.f32.mrb[12].mxu0 }
 0x3ee   : > { %v1106_v40 = vadd.f32 %v1539_v28, %v989_v36  ;;  %v1085_v42 = vpop.f32.mrb[13].mxu0 }
 0x3ef   : > { %v1104_v50 = vadd.f32 %v1085_v42, %v987_v37  ;;  %v1540_v55 = vpop.f32.mrb[14].mxu0 }
 0x3f0   : > { %1114 = vst.msk [vmem:[#allocation5 + $0x30] sm:$0xff] %vm509_vm0, %v1106_v40  ;;  %v1107_v58 = vadd.f32 %v1540_v55, %v990_v30  ;;  %v1088_v63 = vpop.f32.mrb[15].mxu0 }
 0x3f1   : > { %1112 = vst.msk [vmem:[#allocation5 + $0x20] sm:$0xff] %vm509_vm0, %v1104_v50  ;;  %v1105_v0 = vadd.f32 %v1088_v63, %v988_v48 }
 0x3f2   : > { %1115 = vst.msk [vmem:[#allocation5 + $0x38] sm:$0xff] %vm509_vm0, %v1107_v58 }
 0x3f3   : > { %1113 = vst.msk [vmem:[#allocation5 + $0x28] sm:$0xff] %vm509_vm0, %v1105_v0 }
 0x3f8   : > { %v1163_v51 = vld [vmem:[#allocation5 + $0x20] sm:$0xff] }
 0x3f9   : > { %v1166_v60 = vld [vmem:[#allocation5 + $0x38] sm:$0xff] }
 0x3fa   : > { %v1164_v53 = vld [vmem:[#allocation5 + $0x28] sm:$0xff] }
 0x42a   : > { %v1180_v23 = vpop.permute.xlu1 %1179 }
 0x42b   : > { %v1185_v18 = vpop.permute.xlu0 %1184  ;;  %v1209_v46 = vmul.f32 %v1180_v23, %v1161_v20 }
 0x42c   : > { %v1210_v38 = vmul.f32 %v1185_v18, %v1162_v3 }
 0x42d   : > { %v1217_v39 = vadd.f32 %v1437_v11, %v1209_v46 }
 0x42e   : > { %v1218_v41 = vadd.f32 %v1438_v12, %v1210_v38 }
 0x42f   : > { %1225 = vst.msk [vmem:[%s2138_s16 + $0x10] sm:$0xff] %vm509_vm0, %v1217_v39  ;;  %v1175_v43 = vpop.permute.xlu0 %1174  ;;  %v1170_v47 = vpop.permute.xlu1 %1169 }
 0x430   : > { %1226 = vst.msk [vmem:[%s2138_s16 + $0x18] sm:$0xff] %vm509_vm0, %v1218_v41  ;;  %v1208_v49 = vmul.f32 %v1175_v43, %v1160_v44  ;;  %v1207_v11 = vmul.f32 %v1170_v47, %v1159_v45 }
 0x432   : > { %v1216_v7 = vadd.f32 %v1434_v10, %v1208_v49  ;;  %v1215_v12 = vadd.f32 %v1433_v9, %v1207_v11  ;;  %v1165_v9 = vld [vmem:[#allocation5 + $0x30] sm:$0xff] }
 0x434   : > { %1224 = vst.msk [vmem:[%s2138_s16 + $0x8] sm:$0xff] %vm509_vm0, %v1216_v7  ;;  %1223 = vst.msk [vmem:[%s2138_s16] sm:$0xff] %vm509_vm0, %v1215_v12 }
 0x43b   : > { %v1190_v52 = vpop.permute.xlu1 %1189 }
 0x43c   : > { %v1195_v54 = vpop.permute.xlu0 %1194  ;;  %v1211_v56 = vmul.f32 %v1190_v52, %v1163_v51 }
 0x43d   : > { %v1212_v57 = vmul.f32 %v1195_v54, %v1164_v53 }
 0x43e   : > { %v1219_v59 = vadd.f32 %v1441_v14, %v1211_v56 }
 0x43f   : > { %v1220_v5 = vadd.f32 %v1442_v15, %v1212_v57  ;;  %v1200_v10 = vpop.permute.xlu1 %1199 }
 0x440   : > { %1227 = vst.msk [vmem:[%s2138_s16 + $0x20] sm:$0xff] %vm509_vm0, %v1219_v59  ;;  %v1205_v61 = vpop.permute.xlu0 %1204  ;;  %v1213_v62 = vmul.f32 %v1200_v10, %v1165_v9 }
 0x441   : > { %1228 = vst.msk [vmem:[%s2138_s16 + $0x28] sm:$0xff] %vm509_vm0, %v1220_v5  ;;  %v1214_v1 = vmul.f32 %v1205_v61, %v1166_v60 }
 0x442   : > { %v1221_v8 = vadd.f32 %v1445_v16, %v1213_v62 }
 0x443   : > { %v1222_v14 = vadd.f32 %v1446_v17, %v1214_v1 }
 0x444   : > { %1229 = vst.msk [vmem:[%s2138_s16 + $0x30] sm:$0xff] %vm509_vm0, %v1221_v8 }
 0x445   : > { %1230 = vst.msk [vmem:[%s2138_s16 + $0x38] sm:$0xff] %vm509_vm0, %v1222_v14 }
 0x446   : > { %1672 = shalt.err (!%p1669_p5)
}
 0x447   : > { %s1673_s8 = scalar_lea.hbm %s2167_s22, 1024  ;;  %s1677_s15 = scalar_lea.hbm %s2232_s7, 2048 }
 0x448   : > { %p1674_p6 = scmp.ne.s32.totalorder %s2167_s22, %s1673_s8  ;;  %p1678_p10 = scmp.lt.u32.totalorder %s2167_s22, %s2232_s7 }
 0x449   : > { %p1679_p11 = scmp.lt.u32.totalorder %s1677_s15, %s1673_s8  ;;  %p1681_p13 = scmp.lt.u32.totalorder %s1673_s8, %s2167_s22 }
 0x44a   : > { %p1675_p7 = pnand %p1674_p6, %p1825_p4 }
 0x44b   : > { %p1680_p12 = por %p1679_p11, %p1678_p10 }
 0x44c   : > { %p1676_p9 = pneg %p1675_p7 }
 0x44d   : > { %p1682_p0 = por %p1681_p13, %p1680_p12 }
 0x44f   : > { %p1683_p1 = pnand %p1682_p0, %p1676_p9 }
 0x451   : > { %1686 = shalt.err (!%p1683_p1)
}
 0x452   : > { %s1743_s20 = smov 128   ;;  %s1744_s21 = smov 8  }
 0x453   : > { %1545 = dma.vmem_to_hbm [thread:$0]  (%p1825_p4), %s2169_s18, 1024, %s2167_s22, %s2179_s27, %s1743_s20, %s1743_s20, %s1744_s21  }
 0x454 PF: > { %p1551_p2 = scmp.ge.s32.totalorder %s1737_s29, 2  ;;  %s1262_s23 = sand.u32 1, %s1717_s24  }
 0x455   : > { %s1263_s9 = scalar_lea.sflag [#allocation7], %s1262_s23 }
 0x456   : > { %p1548_p3 = pnand %p1551_p2, %p1832_p8 }
 0x458   : > { %1712 = dma.done.wait (!%p1548_p3), %s1263_s9, 1024  }
 0x459   : > { %1714 = vsyncadd (!%p1548_p3), %s1263_s9, 4294966272  ;;  %s20_s29 = sadd.s32 1, %s1737_s29   ;;  %s2237_s11 = sld [smem:[#allocation9_spill]] }
 0x45a   : > { %p17_p5 = scmp.ge.s32.totalorder %s20_s29, 4   ;;  %s2238_s24 = smov %s1721_s25 }
 0x45b   : > { %s2239_s25 = smov %s1725_s26  ;;  %s2240_s26 = smov %s1838_s14 }
 0x45c   : > { %s2241_s27 = smov %s1733_s28  ;;  %19 = sbr.rel (!%p17_p5) target bundleno = 4 (0x4), region = 103 }
 0x45f   : > { %s2242_s28 = smov %s2237_s11 }
 0x463   :  { %1268 = vsyncpa [#allocation7], 1 }
 0x464   :  { %1270 = vsyncpa [#allocation7 + $0x1], 1 }

</bundles_post_ra>
